<compile_context>
chip_gen: v7x
topology: tpu7x:2x2x1
jax: 0.10.0
libtpu: 0.0.40
codegen_flags: <defaults>
</compile_context>

<pallas_src>
import functools

import jax
import jax.numpy as jnp
from jax.experimental import pallas as pl
from jax.experimental.pallas import tpu as pltpu


def _round_up(x, m):
    return (x + m - 1) // m * m


def _cdiv(a, b):
    return (a + b - 1) // b


def _as_i32(v):
    """uint32 bit pattern -> equivalent (possibly negative) int32 python value."""
    return v - (1 << 32) if v >= (1 << 31) else v


def _srl32(x, s):
    """Logical right shift for int32 arrays (arithmetic shift + mask)."""
    return (x >> s) & ((1 << (32 - s)) - 1)


def _hash32(x):
    """murmur3 fmix32 finalizer on int32 (wrapping arithmetic == uint32)."""
    x = x ^ _srl32(x, 16)
    x = x * _as_i32(0x85EBCA6B)
    x = x ^ _srl32(x, 13)
    x = x * _as_i32(0xC2B2AE35)
    x = x ^ _srl32(x, 16)
    return x


def _std_normal_from_u24(u24):
    """24 uniform bits (int32 in [0, 2^24)) -> N(0,1) via Acklam's inverse
    normal CDF.  Only +,*,/ plus one log and one sqrt: VPU/EUP friendly and
    lowers on every TPU generation and in interpret mode."""
    p = (u24.astype(jnp.float32) + 0.5) * (1.0 / (1 << 24))      # open (0, 1)
    q = p - 0.5
    r = q * q
    num_c = (((((-3.969683028665376e+01 * r + 2.209460984245205e+02) * r
                - 2.759285104469687e+02) * r + 1.383577518672690e+02) * r
                - 3.066479806614716e+01) * r + 2.506628277459239e+00) * q
    den_c = (((((-5.447609879822406e+01 * r + 1.615858368580409e+02) * r
                - 1.556989798598866e+02) * r + 6.680131188771972e+01) * r
                - 1.328068155288572e+01) * r + 1.0)
    x_central = num_c / den_c

    pm = jnp.minimum(p, 1.0 - p)                                  # tail prob
    t = jnp.sqrt(-2.0 * jnp.log(pm))
    num_t = (((((-7.784894002430293e-03 * t - 3.223964580411365e-01) * t
                - 2.400758277161838e+00) * t - 2.549732539343734e+00) * t
                + 4.374664141464968e+00) * t + 2.938163982698783e+00)
    den_t = ((((7.784695709041462e-03 * t + 3.224671290700398e-01) * t
                + 2.445134137142996e+00) * t + 3.754408661907416e+00) * t + 1.0)
    x_tail = jnp.where(q < 0.0, num_t / den_t, -(num_t / den_t))
    return jnp.where(pm < 0.02425, x_tail, x_central)


def _gmf_kernel(seed_ref, x_ref, wmu_ref, wsig_ref, b_ref, o_ref, acc_ref,
                *, x_resident, tk):
    j = pl.program_id(1)                 # output-feature tile
    k = pl.program_id(2)                 # reduction (input-feature) tile
    nk = pl.num_programs(2)

    @pl.when(k == 0)
    def _init():
        acc_ref[...] = jnp.zeros_like(acc_ref)

    tkb, tn = wmu_ref.shape              # weight tiles are (tk, tn) in (K, N) layout
    n_total = tn * pl.num_programs(1)    # N_p

    # ---- in-kernel reparameterization noise (counter-based hash PRNG) -----
    # eps depends only on the global weight-element index + base seed.
    row = jax.lax.broadcasted_iota(jnp.int32, (tkb, tn), 0) + k * tkb
    col = jax.lax.broadcasted_iota(jnp.int32, (tkb, tn), 1) + j * tn
    ctr = row * n_total + col            # global element counter (wraps if huge; fine)
    h = _hash32(ctr * _as_i32(0x9E3779B1) + seed_ref[0])
    eps = _std_normal_from_u24(_srl32(h, 8))

    std = jnp.exp(0.5 * wsig_ref[...].astype(jnp.float32))
    w = (wmu_ref[...].astype(jnp.float32) + eps * std).astype(jnp.bfloat16)

    if x_resident:
        # x block carries the full K extent: slice out this step's tk window.
        xk = x_ref[:, pl.ds(k * tk, tk)]
    else:
        xk = x_ref[...]

    # bf16 MXU feed, f32 accumulation; (K, N) weight layout -> no transpose.
    acc_ref[...] += jnp.dot(xk.astype(jnp.bfloat16), w,
                            preferred_element_type=jnp.float32)

    @pl.when(k == nk - 1)
    def _finalize():
        o_ref[...] = (acc_ref[...] + b_ref[...]).astype(o_ref.dtype)


def gaussian_mean_field_forward(x, w_mu, w_sigma, b_mu, b_sigma, key):
    """Pallas forward for GaussianMeanFieldLayer.

    x: (B, K) f32; w_mu/w_sigma: (N, K) f32; b_mu/b_sigma: (N,) f32.
    Returns (B, N) f32.
    """
    x = jnp.asarray(x, jnp.float32)
    w_mu = jnp.asarray(w_mu, jnp.float32)
    w_sigma = jnp.asarray(w_sigma, jnp.float32)
    b_mu = jnp.asarray(b_mu, jnp.float32).reshape(1, -1)
    b_sigma = jnp.asarray(b_sigma, jnp.float32).reshape(1, -1)

    B, K = x.shape
    N = w_mu.shape[0]

    key_b, key_w = jax.random.split(key)
    # Bias is only N elements: sample it in plain JAX, add in the finalize path.
    eps_b = jax.random.normal(key_b, (1, N), dtype=jnp.float32)
    b = b_mu + eps_b * jnp.exp(0.5 * b_sigma)
    # int32 base seed for the in-kernel hash PRNG (weight noise).
    seed = jax.random.randint(key_w, (1,), 0, jnp.iinfo(jnp.int32).max,
                              dtype=jnp.int32)

    # (K, N) bf16 weight streams: halves the dominant HBM traffic and feeds
    # the MXU in its canonical k-major layout (no per-tile transpose).
    w_mu_t = w_mu.T.astype(jnp.bfloat16)
    w_sigma_t = w_sigma.T.astype(jnp.bfloat16)

    # ---- tile sizing (big tiles, whole batch per tile where possible) ------
    B_8, N_128, K_128 = _round_up(B, 8), _round_up(N, 128), _round_up(K, 128)
    gi = _cdiv(B_8, 1024)
    tb = _round_up(_cdiv(B_8, gi), 8)
    gj = _cdiv(N_128, 512)
    tn = _round_up(_cdiv(N_128, gj), 128)
    gk = _cdiv(K_128, 1024)
    tk = _round_up(_cdiv(K_128, gk), 128)

    # v7x has 2 TensorCores: guarantee >=2 steps on a "parallel" axis.
    if gi == 1 and _cdiv(N_128, tn) == 1:
        if N_128 >= 256:
            tn = _round_up(_cdiv(N_128, 2), 128)
        elif B_8 >= 16:
            tb = _round_up(_cdiv(B_8, 2), 8)

    B_p, N_p, K_p = _round_up(B, tb), _round_up(N, tn), _round_up(K, tk)
    gi, gj, gk = B_p // tb, N_p // tn, K_p // tk

    # x resident (full-K block fetched once per batch tile) when small enough
    # and it would otherwise be re-streamed for every output-feature tile.
    x_resident = (gj > 1) and (tb * K_p * 4 <= 4 * 1024 * 1024)

    # Zero-pad to tile multiples.  Padded x columns are zero, so the noisy
    # padded weight rows contribute nothing; padded output rows/cols are
    # sliced off at the end.
    if (B_p, K_p) != (B, K):
        x = jnp.pad(x, ((0, B_p - B), (0, K_p - K)))
    if (K_p, N_p) != (K, N):
        w_mu_t = jnp.pad(w_mu_t, ((0, K_p - K), (0, N_p - N)))
        w_sigma_t = jnp.pad(w_sigma_t, ((0, K_p - K), (0, N_p - N)))
    if N_p != N:
        b = jnp.pad(b, ((0, 0), (0, N_p - N)))

    if x_resident:
        x_spec = pl.BlockSpec((tb, K_p), lambda i, j, k, s: (i, 0))
    else:
        x_spec = pl.BlockSpec((tb, tk), lambda i, j, k, s: (i, k))

    kernel = functools.partial(_gmf_kernel, x_resident=x_resident, tk=tk)

    out = pl.pallas_call(
        kernel,
        out_shape=jax.ShapeDtypeStruct((B_p, N_p), jnp.float32),
        grid_spec=pltpu.PrefetchScalarGridSpec(
            num_scalar_prefetch=1,
            grid=(gi, gj, gk),
            in_specs=[
                x_spec,                                              # x (f32)
                pl.BlockSpec((tk, tn), lambda i, j, k, s: (k, j)),   # w_mu (K,N) bf16
                pl.BlockSpec((tk, tn), lambda i, j, k, s: (k, j)),   # w_sigma (K,N) bf16
                pl.BlockSpec((1, tn), lambda i, j, k, s: (0, j)),    # sampled bias
            ],
            out_specs=pl.BlockSpec((tb, tn), lambda i, j, k, s: (i, j)),
            scratch_shapes=[pltpu.VMEM((tb, tn), jnp.float32)],
        ),
        compiler_params=pltpu.CompilerParams(
            dimension_semantics=("parallel", "parallel", "arbitrary"),
            vmem_limit_bytes=48 * 1024 * 1024),
        cost_estimate=pl.CostEstimate(
            flops=2 * B_p * N_p * K_p + 40 * N_p * K_p * gi,
            transcendentals=3 * N_p * K_p * gi,     # log + sqrt + exp per weight elem
            bytes_accessed=(4 * B_p * K_p * (1 if (x_resident or gj == 1) else gj)
                            + 2 * 2 * N_p * K_p * gi      # bf16 mu + sigma
                            + 4 * N_p + 4 * B_p * N_p)),
    )(seed, x, w_mu_t, w_sigma_t, b)

    return out[:B, :N]


def _bf16_linear_ref(x, w_mu, b_mu):
    xb = x.astype(jnp.bfloat16).astype(jnp.float32)
    wb = w_mu.astype(jnp.bfloat16).astype(jnp.float32)
    return xb @ wb.T + b_mu[None, :]


if __name__ == "__main__":
    key = jax.random.PRNGKey(0)
    log_sig0 = float(jnp.log(jnp.float32(0.001)))   # reset_parameters() sigma

    # ---- shape 1: module-like small shapes (batch=8, input=32, output=64) --
    B, K, N = 8, 32, 64
    k_x, k_wmu, k_bmu, k_f1, k_f2, key = jax.random.split(key, 6)
    w_mu = 0.1 * jax.random.normal(k_wmu, (N, K), dtype=jnp.float32)
    b_mu = 0.1 * jax.random.normal(k_bmu, (N,), dtype=jnp.float32)
    x = jax.random.normal(k_x, (B, K), dtype=jnp.float32)
    ref = _bf16_linear_ref(x, w_mu, b_mu)

    # Deterministic check: sigma -> -inf collapses the sample onto mu exactly.
    out_det = gaussian_mean_field_forward(
        x, w_mu, jnp.full((N, K), -500.0), b_mu, jnp.full((N,), -500.0), k_f1)
    out_det = jax.block_until_ready(out_det)
    assert out_det.shape == (B, N)
    assert jnp.allclose(out_det, ref, atol=2e-3, rtol=2e-3), \
        "deterministic path mismatch vs reference"

    # Stochastic check: finite, plausibly close to the mean path, noise present.
    out = jax.block_until_ready(gaussian_mean_field_forward(
        x, w_mu, jnp.full((N, K), log_sig0), b_mu, jnp.full((N,), log_sig0), k_f2))
    assert out.shape == (B, N)
    assert bool(jnp.all(jnp.isfinite(out)))
    noise_std = float(jnp.exp(0.5 * log_sig0)) * (
        float(jnp.sqrt(jnp.sum(x ** 2, axis=1)).max()) + 1.0)
    dev = float(jnp.max(jnp.abs(out - ref)))
    assert dev < 10.0 * noise_std, "stochastic output deviates implausibly"
    assert dev > 1e-3, "no reparameterization noise was injected"

    # ---- shape 2: exercises resident-x block + split output-feature grid ---
    B2, K2, N2 = 16, 128, 256
    k_x2, k_w2, k_b2, k_f3, key = jax.random.split(key, 5)
    x2 = jax.random.normal(k_x2, (B2, K2), dtype=jnp.float32)
    w_mu2 = 0.1 * jax.random.normal(k_w2, (N2, K2), dtype=jnp.float32)
    b_mu2 = 0.1 * jax.random.normal(k_b2, (N2,), dtype=jnp.float32)
    ref2 = _bf16_linear_ref(x2, w_mu2, b_mu2)
    out2 = jax.block_until_ready(gaussian_mean_field_forward(
        x2, w_mu2, jnp.full((N2, K2), -500.0), b_mu2, jnp.full((N2,), -500.0), k_f3))
    assert jnp.allclose(out2, ref2, atol=5e-3, rtol=5e-3), "shape-2 mismatch"

    # ---- in-kernel N(0,1) sampler statistics (mu=0, sigma=log 1, x=I) ------
    B3 = K3 = 128
    N3 = 256
    k_f4, key = jax.random.split(key)
    eps_out = jax.block_until_ready(gaussian_mean_field_forward(
        jnp.eye(K3, dtype=jnp.float32),
        jnp.zeros((N3, K3)), jnp.zeros((N3, K3)),
        jnp.zeros((N3,)), jnp.full((N3,), -500.0), k_f4))
    m = float(jnp.mean(eps_out))
    s = float(jnp.std(eps_out))
    assert abs(m) < 0.05 and abs(s - 1.0) < 0.05, \
        f"in-kernel normal sampler stats off: mean={m:.4f} std={s:.4f}"

    print("KERNEL_OK")
</pallas_src>

<mosaic_0001>
module attributes {stable_mosaic.version = 11 : i64} {
  func.func @_gmf_kernel(%arg0: i32, %arg1: i32, %arg2: i32, %arg3: memref<1xi32, #tpu.memory_space<smem>>, %arg4: memref<8x128xf32, #tpu.memory_space<vmem>>, %arg5: memref<128x128xbf16, #tpu.memory_space<vmem>>, %arg6: memref<128x128xbf16, #tpu.memory_space<vmem>>, %arg7: memref<1x128xf32, #tpu.memory_space<vmem>>, %arg8: memref<8x128xf32, #tpu.memory_space<vmem>>, %arg9: memref<8x128xf32, #tpu.memory_space<vmem>>) attributes {dimension_semantics = [#tpu.dimension_semantics<parallel>, #tpu.dimension_semantics<parallel>, #tpu.dimension_semantics<arbitrary>], iteration_bounds = array<i64: 1, 1, 1>, scalar_prefetch = 1 : i64, scratch_operands = 1 : i64, tpu.core_type = #tpu.core_type<tc>, window_params = [{transform_indices = @transform_0, window_bounds = array<i64: 8, 128>}, {transform_indices = @transform_1, window_bounds = array<i64: 128, 128>}, {transform_indices = @transform_2, window_bounds = array<i64: 128, 128>}, {transform_indices = @transform_3, window_bounds = array<i64: 1, 128>}, {transform_indices = @transform_4, window_bounds = array<i64: 8, 128>}]} {
    %c0_i32 = arith.constant 0 : i32
    %0 = arith.cmpi eq, %arg2, %c0_i32 : i32
    %1 = arith.extui %0 : i1 to i32
    %c0_i32_0 = arith.constant 0 : i32
    %2 = arith.cmpi ne, %1, %c0_i32_0 : i32
    scf.if %2 {
      %cst_49 = arith.constant 0.000000e+00 : f32
      %149 = vector.broadcast %cst_49 : f32 to vector<8x128xf32>
      %c0_50 = arith.constant 0 : index
      %c0_51 = arith.constant 0 : index
      %150 = vector.load %arg9[%c0_50, %c0_51] : memref<8x128xf32, #tpu.memory_space<vmem>>, vector<8x128xf32>
      tpu.vector_store %arg9[%c0_50, %c0_51], %149 {strides = array<i32>} : memref<8x128xf32, #tpu.memory_space<vmem>>, vector<8x128xf32>,
    } else {
    }
    %3 = tpu.iota {dimensions = array<i32: 0>} : vector<128x128xi32>
    %c128_i32 = arith.constant 128 : i32
    %4 = arith.muli %arg2, %c128_i32 : i32
    %5 = vector.broadcast %4 : i32 to vector<128x128xi32>
    %6 = arith.addi %3, %5 : vector<128x128xi32>
    %7 = tpu.iota {dimensions = array<i32: 1>} : vector<128x128xi32>
    %c128_i32_1 = arith.constant 128 : i32
    %8 = arith.muli %arg1, %c128_i32_1 : i32
    %9 = vector.broadcast %8 : i32 to vector<128x128xi32>
    %10 = arith.addi %7, %9 : vector<128x128xi32>
    %c128_i32_2 = arith.constant 128 : i32
    %11 = vector.broadcast %c128_i32_2 : i32 to vector<128x128xi32>
    %12 = arith.muli %6, %11 : vector<128x128xi32>
    %13 = arith.addi %12, %10 : vector<128x128xi32>
    %c-1640531535_i32 = arith.constant -1640531535 : i32
    %14 = vector.broadcast %c-1640531535_i32 : i32 to vector<128x128xi32>
    %15 = arith.muli %13, %14 : vector<128x128xi32>
    %c0 = arith.constant 0 : index
    %16 = memref.load %arg3[%c0] : memref<1xi32, #tpu.memory_space<smem>>
    %17 = vector.broadcast %16 : i32 to vector<128x128xi32>
    %18 = arith.addi %15, %17 : vector<128x128xi32>
    %c16_i32 = arith.constant 16 : i32
    %19 = vector.broadcast %c16_i32 : i32 to vector<128x128xi32>
    %20 = arith.shrsi %18, %19 : vector<128x128xi32>
    %c65535_i32 = arith.constant 65535 : i32
    %21 = vector.broadcast %c65535_i32 : i32 to vector<128x128xi32>
    %22 = arith.andi %20, %21 : vector<128x128xi32>
    %23 = arith.xori %18, %22 : vector<128x128xi32>
    %c-2048144789_i32 = arith.constant -2048144789 : i32
    %24 = vector.broadcast %c-2048144789_i32 : i32 to vector<128x128xi32>
    %25 = arith.muli %23, %24 : vector<128x128xi32>
    %c13_i32 = arith.constant 13 : i32
    %26 = vector.broadcast %c13_i32 : i32 to vector<128x128xi32>
    %27 = arith.shrsi %25, %26 : vector<128x128xi32>
    %c524287_i32 = arith.constant 524287 : i32
    %28 = vector.broadcast %c524287_i32 : i32 to vector<128x128xi32>
    %29 = arith.andi %27, %28 : vector<128x128xi32>
    %30 = arith.xori %25, %29 : vector<128x128xi32>
    %c-1028477387_i32 = arith.constant -1028477387 : i32
    %31 = vector.broadcast %c-1028477387_i32 : i32 to vector<128x128xi32>
    %32 = arith.muli %30, %31 : vector<128x128xi32>
    %c16_i32_3 = arith.constant 16 : i32
    %33 = vector.broadcast %c16_i32_3 : i32 to vector<128x128xi32>
    %34 = arith.shrsi %32, %33 : vector<128x128xi32>
    %c65535_i32_4 = arith.constant 65535 : i32
    %35 = vector.broadcast %c65535_i32_4 : i32 to vector<128x128xi32>
    %36 = arith.andi %34, %35 : vector<128x128xi32>
    %37 = arith.xori %32, %36 : vector<128x128xi32>
    %c8_i32 = arith.constant 8 : i32
    %38 = vector.broadcast %c8_i32 : i32 to vector<128x128xi32>
    %39 = arith.shrsi %37, %38 : vector<128x128xi32>
    %c16777215_i32 = arith.constant 16777215 : i32
    %40 = vector.broadcast %c16777215_i32 : i32 to vector<128x128xi32>
    %41 = arith.andi %39, %40 : vector<128x128xi32>
    %42 = arith.sitofp %41 : vector<128x128xi32> to vector<128x128xf32>
    %cst = arith.constant 5.000000e-01 : f32
    %43 = vector.broadcast %cst : f32 to vector<128x128xf32>
    %44 = arith.addf %42, %43 : vector<128x128xf32>
    %cst_5 = arith.constant 5.96046448E-8 : f32
    %45 = vector.broadcast %cst_5 : f32 to vector<128x128xf32>
    %46 = arith.mulf %44, %45 : vector<128x128xf32>
    %cst_6 = arith.constant 5.000000e-01 : f32
    %47 = vector.broadcast %cst_6 : f32 to vector<128x128xf32>
    %48 = arith.subf %46, %47 : vector<128x128xf32>
    %49 = arith.mulf %48, %48 : vector<128x128xf32>
    %cst_7 = arith.constant -39.6968307 : f32
    %50 = vector.broadcast %cst_7 : f32 to vector<128x128xf32>
    %51 = arith.mulf %50, %49 : vector<128x128xf32>
    %cst_8 = arith.constant 220.946106 : f32
    %52 = vector.broadcast %cst_8 : f32 to vector<128x128xf32>
    %53 = arith.addf %51, %52 : vector<128x128xf32>
    %54 = arith.mulf %53, %49 : vector<128x128xf32>
    %cst_9 = arith.constant 275.928497 : f32
    %55 = vector.broadcast %cst_9 : f32 to vector<128x128xf32>
    %56 = arith.subf %54, %55 : vector<128x128xf32>
    %57 = arith.mulf %56, %49 : vector<128x128xf32>
    %cst_10 = arith.constant 138.357758 : f32
    %58 = vector.broadcast %cst_10 : f32 to vector<128x128xf32>
    %59 = arith.addf %57, %58 : vector<128x128xf32>
    %60 = arith.mulf %59, %49 : vector<128x128xf32>
    %cst_11 = arith.constant 30.6647987 : f32
    %61 = vector.broadcast %cst_11 : f32 to vector<128x128xf32>
    %62 = arith.subf %60, %61 : vector<128x128xf32>
    %63 = arith.mulf %62, %49 : vector<128x128xf32>
    %cst_12 = arith.constant 2.50662827 : f32
    %64 = vector.broadcast %cst_12 : f32 to vector<128x128xf32>
    %65 = arith.addf %63, %64 : vector<128x128xf32>
    %66 = arith.mulf %65, %48 : vector<128x128xf32>
    %cst_13 = arith.constant -54.4760971 : f32
    %67 = vector.broadcast %cst_13 : f32 to vector<128x128xf32>
    %68 = arith.mulf %67, %49 : vector<128x128xf32>
    %cst_14 = arith.constant 161.585831 : f32
    %69 = vector.broadcast %cst_14 : f32 to vector<128x128xf32>
    %70 = arith.addf %68, %69 : vector<128x128xf32>
    %71 = arith.mulf %70, %49 : vector<128x128xf32>
    %cst_15 = arith.constant 155.698975 : f32
    %72 = vector.broadcast %cst_15 : f32 to vector<128x128xf32>
    %73 = arith.subf %71, %72 : vector<128x128xf32>
    %74 = arith.mulf %73, %49 : vector<128x128xf32>
    %cst_16 = arith.constant 66.8013153 : f32
    %75 = vector.broadcast %cst_16 : f32 to vector<128x128xf32>
    %76 = arith.addf %74, %75 : vector<128x128xf32>
    %77 = arith.mulf %76, %49 : vector<128x128xf32>
    %cst_17 = arith.constant 13.2806816 : f32
    %78 = vector.broadcast %cst_17 : f32 to vector<128x128xf32>
    %79 = arith.subf %77, %78 : vector<128x128xf32>
    %80 = arith.mulf %79, %49 : vector<128x128xf32>
    %cst_18 = arith.constant 1.000000e+00 : f32
    %81 = vector.broadcast %cst_18 : f32 to vector<128x128xf32>
    %82 = arith.addf %80, %81 : vector<128x128xf32>
    %83 = arith.divf %66, %82 : vector<128x128xf32>
    %cst_19 = arith.constant 1.000000e+00 : f32
    %84 = vector.broadcast %cst_19 : f32 to vector<128x128xf32>
    %85 = arith.subf %84, %46 : vector<128x128xf32>
    %86 = arith.minimumf %46, %85 : vector<128x128xf32>
    %87 = math.log %86 : vector<128x128xf32>
    %cst_20 = arith.constant -2.000000e+00 : f32
    %88 = vector.broadcast %cst_20 : f32 to vector<128x128xf32>
    %89 = arith.mulf %88, %87 : vector<128x128xf32>
    %90 = math.sqrt %89 : vector<128x128xf32>
    %cst_21 = arith.constant -0.0077848942 : f32
    %91 = vector.broadcast %cst_21 : f32 to vector<128x128xf32>
    %92 = arith.mulf %91, %90 : vector<128x128xf32>
    %cst_22 = arith.constant 0.322396457 : f32
    %93 = vector.broadcast %cst_22 : f32 to vector<128x128xf32>
    %94 = arith.subf %92, %93 : vector<128x128xf32>
    %95 = arith.mulf %94, %90 : vector<128x128xf32>
    %cst_23 = arith.constant 2.40075827 : f32
    %96 = vector.broadcast %cst_23 : f32 to vector<128x128xf32>
    %97 = arith.subf %95, %96 : vector<128x128xf32>
    %98 = arith.mulf %97, %90 : vector<128x128xf32>
    %cst_24 = arith.constant 2.54973245 : f32
    %99 = vector.broadcast %cst_24 : f32 to vector<128x128xf32>
    %100 = arith.subf %98, %99 : vector<128x128xf32>
    %101 = arith.mulf %100, %90 : vector<128x128xf32>
    %cst_25 = arith.constant 4.37466431 : f32
    %102 = vector.broadcast %cst_25 : f32 to vector<128x128xf32>
    %103 = arith.addf %101, %102 : vector<128x128xf32>
    %104 = arith.mulf %103, %90 : vector<128x128xf32>
    %cst_26 = arith.constant 2.938164 : f32
    %105 = vector.broadcast %cst_26 : f32 to vector<128x128xf32>
    %106 = arith.addf %104, %105 : vector<128x128xf32>
    %cst_27 = arith.constant 0.00778469583 : f32
    %107 = vector.broadcast %cst_27 : f32 to vector<128x128xf32>
    %108 = arith.mulf %107, %90 : vector<128x128xf32>
    %cst_28 = arith.constant 0.322467119 : f32
    %109 = vector.broadcast %cst_28 : f32 to vector<128x128xf32>
    %110 = arith.addf %108, %109 : vector<128x128xf32>
    %111 = arith.mulf %110, %90 : vector<128x128xf32>
    %cst_29 = arith.constant 2.44513416 : f32
    %112 = vector.broadcast %cst_29 : f32 to vector<128x128xf32>
    %113 = arith.addf %111, %112 : vector<128x128xf32>
    %114 = arith.mulf %113, %90 : vector<128x128xf32>
    %cst_30 = arith.constant 3.7544086 : f32
    %115 = vector.broadcast %cst_30 : f32 to vector<128x128xf32>
    %116 = arith.addf %114, %115 : vector<128x128xf32>
    %117 = arith.mulf %116, %90 : vector<128x128xf32>
    %cst_31 = arith.constant 1.000000e+00 : f32
    %118 = vector.broadcast %cst_31 : f32 to vector<128x128xf32>
    %119 = arith.addf %117, %118 : vector<128x128xf32>
    %cst_32 = arith.constant 0.000000e+00 : f32
    %120 = vector.broadcast %cst_32 : f32 to vector<128x128xf32>
    %121 = arith.cmpf olt, %48, %120 : vector<128x128xf32>
    %122 = arith.divf %106, %119 : vector<128x128xf32>
    %123 = arith.divf %106, %119 : vector<128x128xf32>
    %cst_33 = arith.constant 0.000000e+00 : f32
    %124 = vector.broadcast %cst_33 : f32 to vector<128x128xf32>
    %125 = arith.subf %124, %123 : vector<128x128xf32>
    %126 = arith.select %121, %122, %125 : vector<128x128xi1>, vector<128x128xf32>
    %cst_34 = arith.constant 2.425000e-02 : f32
    %127 = vector.broadcast %cst_34 : f32 to vector<128x128xf32>
    %128 = arith.cmpf olt, %86, %127 : vector<128x128xf32>
    %129 = arith.select %128, %126, %83 : vector<128x128xi1>, vector<128x128xf32>
    %c0_35 = arith.constant 0 : index
    %c0_36 = arith.constant 0 : index
    %130 = vector.load %arg6[%c0_35, %c0_36] : memref<128x128xbf16, #tpu.memory_space<vmem>>, vector<128x128xbf16>
    %131 = arith.extf %130 : vector<128x128xbf16> to vector<128x128xf32>
    %cst_37 = arith.constant 5.000000e-01 : f32
    %132 = vector.broadcast %cst_37 : f32 to vector<128x128xf32>
    %133 = arith.mulf %132, %131 : vector<128x128xf32>
    %134 = math.exp %133 : vector<128x128xf32>
    %c0_38 = arith.constant 0 : index
    %c0_39 = arith.constant 0 : index
    %135 = vector.load %arg5[%c0_38, %c0_39] : memref<128x128xbf16, #tpu.memory_space<vmem>>, vector<128x128xbf16>
    %136 = arith.extf %135 : vector<128x128xbf16> to vector<128x128xf32>
    %137 = arith.mulf %129, %134 : vector<128x128xf32>
    %138 = arith.addf %136, %137 : vector<128x128xf32>
    %139 = arith.truncf %138 : vector<128x128xf32> to vector<128x128xbf16>
    %c0_40 = arith.constant 0 : index
    %c0_41 = arith.constant 0 : index
    %140 = vector.load %arg4[%c0_40, %c0_41] : memref<8x128xf32, #tpu.memory_space<vmem>>, vector<8x128xf32>
    %c0_42 = arith.constant 0 : index
    %c0_43 = arith.constant 0 : index
    %141 = vector.load %arg9[%c0_42, %c0_43] : memref<8x128xf32, #tpu.memory_space<vmem>>, vector<8x128xf32>
    %142 = arith.truncf %140 : vector<8x128xf32> to vector<8x128xbf16>
    %cst_44 = arith.constant dense<0.000000e+00> : vector<8x128xf32>
    %143 = tpu.matmul %142, %139, %cst_44 {dimension_numbers = #tpu.dot_dimension_numbers<[1], [0], [0], [1], [0, 0, 1, 1], [], []>} : vector<8x128xbf16>, vector<128x128xbf16>, vector<8x128xf32> -> vector<8x128xf32>
    %144 = arith.addf %141, %143 : vector<8x128xf32>
    %c0_45 = arith.constant 0 : index
    %c0_46 = arith.constant 0 : index
    %145 = vector.load %arg9[%c0_45, %c0_46] : memref<8x128xf32, #tpu.memory_space<vmem>>, vector<8x128xf32>
    tpu.vector_store %arg9[%c0_45, %c0_46], %144 {strides = array<i32>} : memref<8x128xf32, #tpu.memory_space<vmem>>, vector<8x128xf32>,
    %c0_i32_47 = arith.constant 0 : i32
    %146 = arith.cmpi eq, %arg2, %c0_i32_47 : i32
    %147 = arith.extui %146 : i1 to i32
    %c0_i32_48 = arith.constant 0 : i32
    %148 = arith.cmpi ne, %147, %c0_i32_48 : i32
    scf.if %148 {
      %c0_49 = arith.constant 0 : index
      %c0_50 = arith.constant 0 : index
      %149 = vector.load %arg9[%c0_49, %c0_50] : memref<8x128xf32, #tpu.memory_space<vmem>>, vector<8x128xf32>
      %c0_51 = arith.constant 0 : index
      %c0_52 = arith.constant 0 : index
      %150 = vector.load %arg7[%c0_51, %c0_52] : memref<1x128xf32, #tpu.memory_space<vmem>>, vector<1x128xf32>
      %151 = vector.broadcast %150 : vector<1x128xf32> to vector<8x128xf32>
      %152 = arith.addf %149, %151 : vector<8x128xf32>
      %c0_53 = arith.constant 0 : index
      %c0_54 = arith.constant 0 : index
      %153 = vector.load %arg8[%c0_53, %c0_54] : memref<8x128xf32, #tpu.memory_space<vmem>>, vector<8x128xf32>
      tpu.vector_store %arg8[%c0_53, %c0_54], %152 {strides = array<i32>} : memref<8x128xf32, #tpu.memory_space<vmem>>, vector<8x128xf32>,
    } else {
    }
    return
  }
  func.func @transform_0(%arg0: i32, %arg1: i32, %arg2: i32, %arg3: memref<1xi32, #tpu.memory_space<smem>>) -> (i32, i32) {
    %c0_i32 = arith.constant 0 : i32
    return %arg0, %arg2 : i32, i32
  }
  func.func @transform_1(%arg0: i32, %arg1: i32, %arg2: i32, %arg3: memref<1xi32, #tpu.memory_space<smem>>) -> (i32, i32) {
    %c0_i32 = arith.constant 0 : i32
    return %arg2, %arg1 : i32, i32
  }
  func.func @transform_2(%arg0: i32, %arg1: i32, %arg2: i32, %arg3: memref<1xi32, #tpu.memory_space<smem>>) -> (i32, i32) {
    %c0_i32 = arith.constant 0 : i32
    return %arg2, %arg1 : i32, i32
  }
  func.func @transform_3(%arg0: i32, %arg1: i32, %arg2: i32, %arg3: memref<1xi32, #tpu.memory_space<smem>>) -> (i32, i32) {
    %c0_i32 = arith.constant 0 : i32
    %c0_i32_0 = arith.constant 0 : i32
    return %c0_i32, %arg1 : i32, i32
  }
  func.func @transform_4(%arg0: i32, %arg1: i32, %arg2: i32, %arg3: memref<1xi32, #tpu.memory_space<smem>>) -> (i32, i32) {
    %c0_i32 = arith.constant 0 : i32
    return %arg0, %arg1 : i32, i32
  }
}

</mosaic_0001>

<bundles_post_ra>
// kernel: tpu_custom_call.1
= control target key start
LH: loop header
LB: loop body
LE: loop exit
PB: predicated region body
PF: predicated region fallthrough
CT: control target
= control target key end

     0   :  { %11 = vsyncpa [#allocation6], 0  ;;  %s3269_s0 = inlined_call_operand.<no memory space> [shape: s32[1], index: 0, kind: input, shape index: {}]   ;;  %s3270_s1 = inlined_call_operand.hbm [shape: f32[8,128], index: 1, kind: input, shape index: {}]   ;;  %s3271_s2 = inlined_call_operand.hbm [shape: bf16[128,128], index: 2, kind: input, shape index: {}]   ;;  %s3272_s3 = inlined_call_operand.hbm [shape: bf16[128,128], index: 3, kind: input, shape index: {}]   ;;  %s3273_s4 = inlined_call_operand.vmem [shape: f32[1,128], index: 4, kind: input, shape index: {}]   ;;  %s3274_s5 = inlined_call_operand.hbm [shape: f32[8,128], index: 5, kind: output, shape index: {}]  }
   0x1   :  { %12 = vsyncpa [#allocation9], 0 }
   0x2   :  { %13 = vsyncpa [#allocation7], 0  ;;  %s2207_s18 = smov [#allocation8]   ;;  %s2113_s22 = scalar_lea.hbm %s3271_s2, 1024 }
   0x3   :  { %s29_s19 = sshll.u32 %s2207_s18, 4  ;;  %p2114_p0 = scmp.ne.s32.totalorder %s3271_s2, %s2113_s22  ;;  %s30_s19 = int_to_ptr.vmem [resolvable:$true] %s29_s19 }
   0x4   :  { %p2117_p1 = scmp.lt.u32.totalorder %s2113_s22, %s3271_s2 }
   0x6   :  { %p2119_p2 = pnand %p2117_p1, %p2114_p0 }
   0x8   :  { %2122 = shalt.err (!%p2119_p2)
}
   0x9   :  { %s2123_s27 = scalar_lea.vmem %s30_s19, 1024  ;;  %p2128_p4 = scmp.lt.s32.totalorder %s30_s19, %s30_s19 }
   0xa   :  { %p2124_p3 = scmp.ne.s32.totalorder %s30_s19, %s2123_s27  ;;  %p2129_p5 = scmp.lt.s32.totalorder %s2123_s27, %s2123_s27 }
   0xc   :  { %p2130_p6 = por %p2129_p5, %p2128_p4 }
   0xe   :  { %p2131_p7 = pnand %p2130_p6, %p2124_p3 }
  0x10   :  { %2134 = shalt.err (!%p2131_p7)
}
  0x11   :  { %s2208_s28 = smov 64   ;;  %s2209_s29 = smov 4  }
  0x12   :  { %35 = dma.hbm_to_vmem [thread:$0]  %s3271_s2, 1024, %s30_s19, [#allocation9], %s2208_s28, %s2208_s28, %s2209_s29  }
  0x13   :  { %s2210_s7 = smov [#allocation5]   ;;  %s2211_s9 = smov [#allocation10]  }
  0x14   :  { %s20_s8 = sshll.u32 %s2210_s7, 4  ;;  %s41_s10 = sshll.u32 %s2211_s9, 4  ;;  %s21_s8 = int_to_ptr.vmem [resolvable:$true] %s20_s8  ;;  %s42_s10 = int_to_ptr.vmem [resolvable:$true] %s41_s10 }
  0x15   :  { %s2135_s13 = scalar_lea.hbm %s3270_s1, 128 }
  0x16   :  { %p2136_p8 = scmp.ne.s32.totalorder %s3270_s1, %s2135_s13  ;;  %p2139_p9 = scmp.lt.u32.totalorder %s2135_s13, %s3270_s1 }
  0x18   :  { %p2141_p10 = pnand %p2139_p9, %p2136_p8 }
  0x1a   :  { %2144 = shalt.err (!%p2141_p10)
}
  0x1b   :  { %s2145_s2 = scalar_lea.vmem %s21_s8, 128  ;;  %p2150_p12 = scmp.lt.s32.totalorder %s21_s8, %s21_s8 }
  0x1c   :  { %p2146_p11 = scmp.ne.s32.totalorder %s21_s8, %s2145_s2  ;;  %p2151_p13 = scmp.lt.s32.totalorder %s2145_s2, %s2145_s2 }
  0x1e   :  { %p2152_p0 = por %p2151_p13, %p2150_p12 }
  0x20   :  { %p2153_p1 = pnand %p2152_p0, %p2146_p11 }
  0x22   :  { %2156 = shalt.err (!%p2153_p1)
}
  0x23   :  { %23 = dma.hbm_to_vmem [thread:$0]  %s3270_s1, 128, %s21_s8, [#allocation6]  }
  0x24   :  { %s2157_s22 = scalar_lea.hbm %s3272_s3, 1024 }
  0x25   :  { %p2158_p2 = scmp.ne.s32.totalorder %s3272_s3, %s2157_s22  ;;  %p2161_p3 = scmp.lt.u32.totalorder %s2157_s22, %s3272_s3 }
  0x27   :  { %p2163_p4 = pnand %p2161_p3, %p2158_p2 }
  0x29   :  { %2166 = shalt.err (!%p2163_p4)
}
  0x2a   :  { %s2167_s27 = scalar_lea.vmem %s42_s10, 1024  ;;  %p2172_p6 = scmp.lt.s32.totalorder %s42_s10, %s42_s10 }
  0x2b   :  { %p2168_p5 = scmp.ne.s32.totalorder %s42_s10, %s2167_s27  ;;  %p2173_p7 = scmp.lt.s32.totalorder %s2167_s27, %s2167_s27 }
  0x2d   :  { %p2174_p8 = por %p2173_p7, %p2172_p6 }
  0x2f   :  { %p2175_p9 = pnand %p2174_p8, %p2168_p5 }
  0x31   :  { %2178 = shalt.err (!%p2175_p9)
}
  0x32   :  { %47 = dma.hbm_to_vmem [thread:$0]  %s3272_s3, 1024, %s42_s10, [#allocation9], %s2208_s28, %s2208_s28, %s2209_s29  }
  0x33   :  { %2201 = dma.done.wait [#allocation6], 128  }
  0x34   :  { %2202 = vsyncadd [#allocation6], 4294967168 }
  0x35   :  { %2203 = dma.done.wait [#allocation9], 2048  }
  0x36   :  { %2204 = vsyncadd [#allocation9], 4294965248  ;;  %v65_v0 = vlaneseq  ;;  %v3275_v1 = vmov 0.0   ;;  %v2300_v11 = vstv %s3269_s0  ;;  %v1839_v36 = vld [vmem:[#allocation10] sm:$0xff]   ;;  %v1902_v53 = vld [vmem:[#allocation10 + $0x8] sm:$0xff]   ;;  %s2214_s6 = smov [#allocation11]  }
  0x37   :  { %1925 = vmatprep.subr.bf16.mxu0 %v3275_v1  ;;  %v1840_v47 = vunpack.c.l.bf16 %v1839_v36  ;;  %v1841_v55 = vunpack.c.h.bf16 %v1839_v36  ;;  %s1635_s7 = sshll.u32 %s2214_s6, 4  ;;  %s1636_s7 = int_to_ptr.vmem [resolvable:$true] %s1635_s7 }
  0x38   :  { %v2288_v2 = vshrl.u32 %v65_v0, 7  ;;  %v2290_v3 = vand.u32 127, %v65_v0  ;;  %s2179_s8 = scalar_lea.vmem %s1636_s7, 128  ;;  %p2184_p11 = scmp.lt.s32.totalorder %s1636_s7, %s1636_s7 }
  0x39   :  { %v1451_v61 = vmul.f32 0.5, %v1840_v47  ;;  %p2180_p10 = scmp.ne.s32.totalorder %s1636_s7, %s2179_s8  ;;  %p2185_p12 = scmp.lt.s32.totalorder %s2179_s8, %s2179_s8 }
  0x3a   :  { %v67_v4 = vadd.s32 8, %v2288_v2  ;;  %v105_v5 = vmul.u32 128, %v2288_v2  ;;  %v68_v6 = vadd.s32 16, %v2288_v2  ;;  %v69_v7 = vadd.s32 24, %v2288_v2 }
  0x3b   :  { %v70_v33 = vadd.s32 32, %v2288_v2  ;;  %v71_v39 = vadd.s32 40, %v2288_v2  ;;  %v2312_v54 = vadd.s32 48, %v2288_v2  ;;  %v2316_v62 = vadd.s32 56, %v2288_v2  ;;  %p2186_p13 = por %p2185_p12, %p2184_p11 }
  0x3c   :  { %v106_v8 = vmul.u32 128, %v67_v4  ;;  %v121_v9 = vadd.s32 %v105_v5, %v2290_v3  ;;  %v107_v10 = vmul.u32 128, %v68_v6  ;;  %v1844_v4 = vunpack.c.l.bf16 %v1902_v53 }
  0x3d   :  { %v108_v12 = vmul.u32 128, %v69_v7  ;;  %v109_v44 = vmul.u32 128, %v70_v33  ;;  %p2187_p0 = pnand %p2186_p13, %p2180_p10 }
  0x3e   :  { %v122_v13 = vadd.s32 %v106_v8, %v2290_v3  ;;  %v137_v14 = vmul.u32 2654435761, %v121_v9  ;;  %v123_v15 = vadd.s32 %v107_v10, %v2290_v3  ;;  %v110_v50 = vmul.u32 128, %v71_v39 }
  0x3f   :  { %v124_v16 = vadd.s32 %v108_v12, %v2290_v3  ;;  %v125_v58 = vadd.s32 %v109_v44, %v2290_v3  ;;  %v2320_v8 = vadd.s32 64, %v2288_v2  ;;  %v2323_v9 = vadd.s32 72, %v2288_v2  ;;  %v2325_v12 = vld [vmem:[#allocation8] sm:$0xff]  }
  0x40   :  { %v138_v17 = vmul.u32 2654435761, %v122_v13  ;;  %v155_v18 = vadd.s32 %v2300_v11, %v137_v14  ;;  %v139_v19 = vmul.u32 2654435761, %v123_v15  ;;  %v126_v5 = vadd.s32 %v110_v50, %v2290_v3 }
  0x41   :  { %v140_v20 = vmul.u32 2654435761, %v124_v16  ;;  %v1452_v10 = vmul.f32 0.5, %v1841_v55  ;;  %v141_v15 = vmul.u32 2654435761, %v125_v58 }
  0x42   :  { %v156_v21 = vadd.s32 %v2300_v11, %v138_v17  ;;  %v1645_v22 = vshrl.u32 %v155_v18, 16  ;;  %v157_v23 = vadd.s32 %v2300_v11, %v139_v19  ;;  %v1845_v19 = vunpack.c.h.bf16 %v1902_v53 }
  0x43   :  { %v158_v24 = vadd.s32 %v2300_v11, %v140_v20 }
  0x44   :  { %v1646_v25 = vshrl.u32 %v156_v21, 16  ;;  %v203_v26 = vxor.u32 %v1645_v22, %v155_v18  ;;  %v1647_v27 = vshrl.u32 %v157_v23, 16  ;;  %v1467_v18 = vmul.f32 1.442695, %v1451_v61 }
  0x45   :  { %v1648_v28 = vshrl.u32 %v158_v24, 16  ;;  %v1453_v22 = vmul.f32 0.5, %v1844_v4 }
  0x46   :  { %v204_v29 = vxor.u32 %v1646_v25, %v156_v21  ;;  %v219_v30 = vmul.u32 2246822507, %v203_v26  ;;  %v205_v31 = vxor.u32 %v1647_v27, %v157_v23  ;;  %v142_v23 = vmul.u32 2654435761, %v126_v5 }
  0x47   :  { %v206_v32 = vxor.u32 %v1648_v28, %v158_v24  ;;  %v1469_v28 = vmul.f32 1.442695, %v1452_v10  ;;  %1953 = vpow2.f32 %v1467_v18 }
  0x48   :  { %v220_v34 = vmul.u32 2246822507, %v204_v29  ;;  %v1661_v35 = vshrl.u32 %v219_v30, 13  ;;  %v221_v37 = vmul.u32 2246822507, %v205_v31  ;;  %v2329_v31 = vld [vmem:[#allocation8 + $0x8] sm:$0xff]   ;;  %v160_v39 = vadd.s32 %v2300_v11, %v142_v23 }
  0x49   :  { %v222_v38 = vmul.u32 2246822507, %v206_v32  ;;  %v159_v32 = vadd.s32 %v2300_v11, %v141_v15  ;;  %1955 = vpow2.f32 %v1469_v28 }
  0x4a   :  { %v1662_v40 = vshrl.u32 %v220_v34, 13  ;;  %v267_v41 = vxor.u32 %v1661_v35, %v219_v30  ;;  %v1663_v42 = vshrl.u32 %v221_v37, 13  ;;  %v1454_v35 = vmul.f32 0.5, %v1845_v19 }
  0x4b   :  { %v1664_v43 = vshrl.u32 %v222_v38, 13  ;;  %v1650_v53 = vshrl.u32 %v160_v39, 16 }
  0x4c   :  { %v268_v45 = vxor.u32 %v1662_v40, %v220_v34  ;;  %v283_v46 = vmul.u32 3266489909, %v267_v41  ;;  %v269_v48 = vxor.u32 %v1663_v42, %v221_v37 }
  0x4d   :  { %v270_v49 = vxor.u32 %v1664_v43, %v222_v38  ;;  %v1471_v38 = vmul.f32 1.442695, %v1453_v22  ;;  %v208_v10 = vxor.u32 %v1650_v53, %v160_v39 }
  0x4e   :  { %v284_v51 = vmul.u32 3266489909, %v268_v45  ;;  %v1677_v52 = vshrl.u32 %v283_v46, 16  ;;  %v285_v56 = vmul.u32 3266489909, %v269_v48 }
  0x4f   :  { %v286_v57 = vmul.u32 3266489909, %v270_v49  ;;  %1957 = vpow2.f32 %v1471_v38 }
  0x50   :  { %v1678_v59 = vshrl.u32 %v284_v51, 16  ;;  %v331_v60 = vxor.u32 %v1677_v52, %v283_v46  ;;  %v1679_v63 = vshrl.u32 %v285_v56, 16  ;;  %v1649_v46 = vshrl.u32 %v159_v32, 16 }
  0x51   :  { %v1680_v0 = vshrl.u32 %v286_v57, 16 }
  0x52   :  { %v332_v6 = vxor.u32 %v1678_v59, %v284_v51  ;;  %v1693_v7 = vshrl.u32 %v331_v60, 8  ;;  %v333_v13 = vxor.u32 %v1679_v63, %v285_v56  ;;  %v2367_v60 = vmul.f32 1.442695, %v1454_v35 }
  0x53   :  { %v334_v14 = vxor.u32 %v1680_v0, %v286_v57  ;;  %v207_v61 = vxor.u32 %v1649_v46, %v159_v32 }
  0x54   :  { %v1694_v16 = vshrl.u32 %v332_v6, 8  ;;  %v379_v17 = vcvt.s32.f32 %v1693_v7  ;;  %v1695_v20 = vshrl.u32 %v333_v13, 8  ;;  %v1903_v13 = vld [vmem:[#allocation10 + $0x10] sm:$0xff]  }
  0x55   :  { %v1696_v21 = vshrl.u32 %v334_v14, 8  ;;  %v2377_v14 = vpop.eup %1953  ;;  %v223_v28 = vmul.u32 2246822507, %v207_v61 }
  0x56   :  { %v380_v24 = vcvt.s32.f32 %v1694_v16  ;;  %v395_v25 = vadd.f32 0.5, %v379_v17  ;;  %v381_v29 = vcvt.s32.f32 %v1695_v20 }
  0x57   :  { %v382_v30 = vcvt.s32.f32 %v1696_v21  ;;  %v1665_v61 = vshrl.u32 %v223_v28, 13 }
  0x58   :  { %v396_v33 = vadd.f32 0.5, %v380_v24  ;;  %v411_v34 = vmul.f32 5.9604645e-08, %v395_v25  ;;  %v397_v36 = vadd.f32 0.5, %v381_v29  ;;  %v2386_v29 = vpop.eup %1955 }
  0x59   :  { %v398_v37 = vadd.f32 0.5, %v382_v30  ;;  %v2390_v39 = vpop.eup %1957 }
  0x5a   :  { %v412_v40 = vmul.f32 5.9604645e-08, %v396_v33  ;;  %v2333_v41 = vadd.f32 -0.5, %v411_v34  ;;  %v827_v42 = vsub.f32 1.0, %v411_v34  ;;  %v2336_v44 = vmul.f32 5.9604645e-08, %v397_v36 }
  0x5b   :  { %v2338_v45 = vmul.f32 5.9604645e-08, %v398_v37  ;;  %v224_v33 = vmul.u32 2246822507, %v208_v10 }
  0x5c   :  { %v2340_v47 = vadd.f32 -0.5, %v412_v40  ;;  %v2344_v48 = vmul.f32 %v2333_v41, %v2333_v41  ;;  %v828_v49 = vsub.f32 1.0, %v412_v40  ;;  %v2346_v50 = vmin.f32 %v411_v34, %v827_v42 }
  0x5d   :  { %v2349_v51 = vadd.f32 -0.5, %v2336_v44  ;;  %v2352_v52 = vadd.f32 -0.5, %v2338_v45  ;;  %v1848_v34 = vunpack.c.l.bf16 %v1903_v13  ;;  %vm1307_vm7 = vcmp.lt.f32.partialorder %v2333_v41, 0.0 }
  0x5e   :  { %v2356_v55 = vmul.f32 %v2340_v47, %v2340_v47  ;;  %v459_v56 = vmul.f32 -39.69683, %v2344_v48  ;;  %v635_v57 = vmul.f32 -54.476097, %v2344_v48  ;;  %v2360_v58 = vmin.f32 %v412_v40, %v828_v49 }
  0x5f   :  { %1959 = vlog2.f32 %v2346_v50  ;;  %v2365_v59 = vmul.f32 %v2349_v51, %v2349_v51  ;;  %v2374_v6 = vmul.f32 %v2352_v52, %v2352_v52  ;;  %v1849_v49 = vunpack.c.h.bf16 %v1903_v13 }
  0x60   :  { %v460_v63 = vmul.f32 -39.69683, %v2356_v55  ;;  %v475_v0 = vadd.f32 220.9461, %v459_v56  ;;  %v636_v4 = vmul.f32 -54.476097, %v2356_v55  ;;  %1961 = vlog2.f32 %v2360_v58 }
  0x61   :  { %v651_v5 = vadd.f32 161.58583, %v635_v57  ;;  %v461_v7 = vmul.f32 -39.69683, %v2365_v59  ;;  %v637_v18 = vmul.f32 -54.476097, %v2365_v59 }
  0x62   :  { %v476_v15 = vadd.f32 220.9461, %v460_v63  ;;  %v491_v16 = vmul.f32 %v475_v0, %v2344_v48  ;;  %v652_v17 = vadd.f32 161.58583, %v636_v4  ;;  %v462_v20 = vmul.f32 -39.69683, %v2374_v6 }
  0x63   :  { %v667_v19 = vmul.f32 %v651_v5, %v2344_v48  ;;  %v477_v21 = vadd.f32 220.9461, %v461_v7  ;;  %v638_v22 = vmul.f32 -54.476097, %v2374_v6  ;;  %v653_v42 = vadd.f32 161.58583, %v637_v18 }
  0x64   :  { %v492_v23 = vmul.f32 %v476_v15, %v2356_v55  ;;  %v1725_v24 = vadd.f32 -275.9285, %v491_v16  ;;  %v668_v25 = vmul.f32 %v652_v17, %v2356_v55  ;;  %v478_v32 = vadd.f32 220.9461, %v462_v20 }
  0x65   :  { %v1757_v30 = vadd.f32 -155.69897, %v667_v19  ;;  %v493_v38 = vmul.f32 %v477_v21, %v2365_v59  ;;  %v654_v46 = vadd.f32 161.58583, %v638_v22  ;;  %v1666_v5 = vshrl.u32 %v224_v33, 13 }
  0x66   :  { %v1726_v35 = vadd.f32 -275.9285, %v492_v23  ;;  %v523_v36 = vmul.f32 %v1725_v24, %v2344_v48  ;;  %v1758_v37 = vadd.f32 -155.69897, %v668_v25  ;;  %v494_v4 = vmul.f32 %v478_v32, %v2374_v6 }
  0x67   :  { %v699_v40 = vmul.f32 %v1757_v30, %v2344_v48  ;;  %v1455_v7 = vmul.f32 0.5, %v1848_v34  ;;  %v1727_v16 = vadd.f32 -275.9285, %v493_v38  ;;  %v111_v17 = vmul.u32 128, %v2312_v54 }
  0x68   :  { %v524_v53 = vmul.f32 %v1726_v35, %v2356_v55  ;;  %v539_v56 = vadd.f32 138.35776, %v523_v36  ;;  %v700_v57 = vmul.f32 %v1758_v37, %v2356_v55  ;;  %v112_v18 = vmul.u32 128, %v2316_v62 }
  0x69   :  { %v1960_v63 = vpop.eup %1959  ;;  %v715_v0 = vadd.f32 66.801315, %v699_v40  ;;  %v669_v20 = vmul.f32 %v653_v42, %v2365_v59  ;;  %v670_v21 = vmul.f32 %v654_v46, %v2374_v6  ;;  %v271_v25 = vxor.u32 %v1665_v61, %v223_v28 }
  0x6a   :  { %v1962_v10 = vpop.eup %1961  ;;  %v860_v15 = vmul.f32 0.6931472, %v1960_v63  ;;  %v540_v13 = vadd.f32 138.35776, %v524_v53  ;;  %v555_v22 = vmul.f32 %v539_v56, %v2344_v48  ;;  %v716_v23 = vadd.f32 66.801315, %v700_v57 }
  0x6b   :  { %v862_v19 = vmul.f32 0.6931472, %v1962_v10  ;;  %v731_v30 = vmul.f32 %v715_v0, %v2344_v48  ;;  %v1728_v34 = vadd.f32 -275.9285, %v494_v4  ;;  %v272_v54 = vxor.u32 %v1666_v5, %v224_v33 }
  0x6c   :  { %v2401_v24 = vmul.f32 -2.0, %v860_v15  ;;  %v525_v62 = vmul.f32 %v1727_v16, %v2365_v59  ;;  %v2408_v35 = vmul.f32 0.5, %v1849_v49  ;;  %v2411_v36 = vadd.s32 %v111_v17, %v2290_v3 }
  0x6d   :  { %v2404_v32 = vmul.f32 -2.0, %v862_v19  ;;  %v556_v37 = vmul.f32 %v540_v13, %v2356_v55  ;;  %v1759_v38 = vadd.f32 -155.69897, %v669_v20  ;;  %v1760_v40 = vadd.f32 -155.69897, %v670_v21 }
  0x6e   :  { %1963 = vrsqrt.f32 %v2401_v24  ;;  %v2415_v28 = vadd.s32 %v112_v18, %v2290_v3  ;;  %v1741_v42 = vadd.f32 -30.664799, %v555_v22  ;;  %v732_v46 = vmul.f32 %v716_v23, %v2356_v55 }
  0x6f   :  { %1965 = vrsqrt.f32 %v2404_v32  ;;  %v287_v33 = vmul.u32 3266489909, %v271_v25  ;;  %v1773_v53 = vadd.f32 -13.280682, %v731_v30  ;;  %v526_v49 = vmul.f32 %v1728_v34, %v2374_v6 }
  0x70   :  { %v829_v56 = vsub.f32 1.0, %v2336_v44  ;;  %v288_v57 = vmul.u32 3266489909, %v272_v54  ;;  %v541_v61 = vadd.f32 138.35776, %v525_v62  ;;  %1967 = vpow2.f32 %v2367_v60 }
  0x71   :  { %v2422_v63 = vmul.f32 1.442695, %v1455_v7  ;;  %v1742_v4 = vadd.f32 -30.664799, %v556_v37  ;;  %v701_v5 = vmul.f32 %v1759_v38, %v2365_v59  ;;  %v702_v10 = vmul.f32 %v1760_v40, %v2374_v6 }
  0x72   :  { %v587_v16 = vmul.f32 %v1741_v42, %v2344_v48  ;;  %v1774_v17 = vadd.f32 -13.280682, %v732_v46  ;;  %v830_v18 = vsub.f32 1.0, %v2338_v45  ;;  %v1681_v13 = vshrl.u32 %v287_v33, 16 }
  0x73   :  { %v763_v19 = vmul.f32 %v1773_v53, %v2344_v48  ;;  %v542_v60 = vadd.f32 138.35776, %v526_v49  ;;  %v2432_v7 = vmin.f32 %v2336_v44, %v829_v56  ;;  %v1682_v20 = vshrl.u32 %v288_v57, 16 }
  0x74   :  { %v2435_v21 = vmul.f32 %v541_v61, %v2365_v59  ;;  %v717_v22 = vadd.f32 66.801315, %v701_v5  ;;  %v718_v23 = vadd.f32 66.801315, %v702_v10  ;;  %v2438_v25 = vmin.f32 %v2338_v45, %v830_v18 }
  0x75   :  { %v588_v30 = vmul.f32 %v1742_v4, %v2356_v55  ;;  %vm909_vm0 = vcmp.eq.f32.partialorder %v2401_v24, inf  ;;  %vm911_vm1 = vcmp.eq.f32.partialorder %v2401_v24, 0.0  ;;  %1969 = vlog2.f32 %v2432_v7 }
  0x76   :  { %v603_v44 = vadd.f32 2.5066283, %v587_v16  ;;  %v764_v34 = vmul.f32 %v1774_v17, %v2356_v55  ;;  %v912_v54 = vand.u32 2147483648, %v2401_v24  ;;  %1971 = vlog2.f32 %v2438_v25 }
  0x77   :  { %v779_v62 = vadd.f32 1.0, %v763_v19  ;;  %vm916_vm2 = vcmp.eq.f32.partialorder %v2404_v32, inf  ;;  %v919_v37 = vand.u32 2147483648, %v2404_v32  ;;  %v733_v40 = vmul.f32 %v717_v22, %v2365_v59 }
  0x78   :  { %v1964_v48 = vpop.eup %1963  ;;  %v734_v42 = vmul.f32 %v718_v23, %v2374_v6  ;;  %v335_v46 = vxor.u32 %v1681_v13, %v287_v33  ;;  %v336_v53 = vxor.u32 %v1682_v20, %v288_v57  ;;  %v2452_v49 = vadd.f32 2.5066283, %v588_v30 }
  0x79   :  { %v908_v45 = vmul.f32 %v1964_v48, %v2401_v24  ;;  %v1966_v38 = vpop.eup %1965  ;;  %vm918_vm3 = vcmp.eq.f32.partialorder %v2404_v32, 0.0  ;;  %v2462_v4 = vmul.f32 %v2333_v41, %v603_v44  ;;  %v780_v10 = vadd.f32 1.0, %v764_v34 }
  0x7a   :  { %v915_v56 = vmul.f32 %v1966_v38, %v2404_v32  ;;  %v2459_v61 = vpop.eup %1967  ;;  %v1697_v33 = vshrl.u32 %v335_v46, 8  ;;  %v1698_v57 = vshrl.u32 %v336_v53, 8  ;;  %v1775_v19 = vadd.f32 -13.280682, %v733_v40 }
  0x7b   :  { %v910_v55 = vsel %vm909_vm0, %v2401_v24, %v908_v45  ;;  %v1776_v20 = vadd.f32 -13.280682, %v734_v42  ;;  %1973 = vrcp.f32 %v779_v62  ;;  %v558_v44 = vmul.f32 %v542_v60, %v2374_v6 }
  0x7c   :  { %v2466_v5 = vsel %vm911_vm1, %v912_v54, %v910_v55  ;;  %v917_v16 = vsel %vm916_vm2, %v2404_v32, %v915_v56  ;;  %v383_v22 = vcvt.s32.f32 %v1697_v33  ;;  %v384_v34 = vcvt.s32.f32 %v1698_v57 }
  0x7d   :  { %v1019_v17 = vmul.f32 -0.007784894, %v2466_v5  ;;  %v1179_v18 = vmul.f32 0.007784696, %v2466_v5  ;;  %v2473_v13 = vsel %vm918_vm3, %v919_v37, %v917_v16  ;;  %1975 = vrcp.f32 %v780_v10 }
  0x7e   :  { %v1020_v24 = vmul.f32 -0.007784894, %v2473_v13  ;;  %v1180_v30 = vmul.f32 0.007784696, %v2473_v13  ;;  %v399_v32 = vadd.f32 0.5, %v383_v22  ;;  %v765_v62 = vmul.f32 %v1775_v19, %v2365_v59 }
  0x7f   :  { %v1789_v23 = vadd.f32 -0.32239646, %v1019_v17  ;;  %v1195_v48 = vadd.f32 0.32246712, %v1179_v18  ;;  %v1970_v54 = vpop.eup %1969  ;;  %v766_v46 = vmul.f32 %v1776_v20, %v2374_v6  ;;  %v400_v16 = vadd.f32 0.5, %v384_v34 }
  0x80   :  { %v1790_v45 = vadd.f32 -0.32239646, %v1020_v24  ;;  %v1196_v38 = vadd.f32 0.32246712, %v1180_v30  ;;  %v1972_v40 = vpop.eup %1971  ;;  %v864_v53 = vmul.f32 0.6931472, %v1970_v54 }
  0x81   :  { %v1051_v37 = vmul.f32 %v1789_v23, %v2466_v5  ;;  %v1211_v42 = vmul.f32 %v1195_v48, %v2466_v5  ;;  %v866_v33 = vmul.f32 0.6931472, %v1972_v40  ;;  %v2486_v17 = vmul.f32 5.9604645e-08, %v399_v32 }
  0x82   :  { %v1052_v55 = vmul.f32 %v1790_v45, %v2473_v13  ;;  %v1212_v60 = vmul.f32 %v1196_v38, %v2473_v13  ;;  %v2484_v10 = vmul.f32 -2.0, %v864_v53  ;;  %v1743_v23 = vadd.f32 -30.664799, %v2435_v21 }
  0x83   :  { %v1805_v56 = vadd.f32 -2.4007583, %v1051_v37  ;;  %v1227_v57 = vadd.f32 2.4451342, %v1211_v42  ;;  %v2489_v19 = vmul.f32 -2.0, %v866_v33  ;;  %v2495_v30 = vadd.f32 -0.5, %v2486_v17 }
  0x84   :  { %v1806_v18 = vadd.f32 -2.4007583, %v1052_v55  ;;  %v1228_v24 = vadd.f32 2.4451342, %v1212_v60  ;;  %1977 = vrsqrt.f32 %v2484_v10  ;;  %v1744_v54 = vadd.f32 -30.664799, %v558_v44 }
  0x85   :  { %v1083_v22 = vmul.f32 %v1805_v56, %v2466_v5  ;;  %v1243_v20 = vmul.f32 %v1227_v57, %v2466_v5  ;;  %v781_v37 = vadd.f32 1.0, %v765_v62  ;;  %1979 = vrsqrt.f32 %v2489_v19  ;;  %v1974_v40 = vpop.eup %1973 }
  0x86   :  { %v1084_v48 = vmul.f32 %v1806_v18, %v2473_v13  ;;  %v1244_v32 = vmul.f32 %v1228_v24, %v2473_v13  ;;  %v416_v38 = vmul.f32 5.9604645e-08, %v400_v16  ;;  %v782_v55 = vadd.f32 1.0, %v766_v46 }
  0x87   :  { %v1821_v34 = vadd.f32 -2.5497324, %v1083_v22  ;;  %v1259_v45 = vadd.f32 3.7544086, %v1243_v20  ;;  %v620_v56 = vmul.f32 %v2340_v47, %v2452_v49  ;;  %v2508_v44 = vmul.f32 %v2495_v30, %v2495_v30  ;;  %v1976_v62 = vpop.eup %1975 }
  0x88   :  { %v1822_v42 = vadd.f32 -2.5497324, %v1084_v48  ;;  %v1260_v53 = vadd.f32 3.7544086, %v1244_v32  ;;  %v2504_v33 = vadd.f32 -0.5, %v416_v38  ;;  %v2513_v18 = vmul.f32 %v1743_v23, %v2365_v59 }
  0x89   :  { %v1115_v21 = vmul.f32 %v1821_v34, %v2466_v5  ;;  %v1275_v60 = vmul.f32 %v1259_v45, %v2466_v5  ;;  %v2516_v46 = vmul.f32 %v1744_v54, %v2374_v6  ;;  %v2519_v49 = vmul.f32 %v1974_v40, %v2462_v4 }
  0x8a   :  { %v1116_v57 = vmul.f32 %v1822_v42, %v2473_v13  ;;  %v1276_v16 = vmul.f32 %v1260_v53, %v2473_v13  ;;  %1981 = vrcp.f32 %v781_v37  ;;  %v2523_v24 = vmul.f32 %v2504_v33, %v2504_v33 }
  0x8b   :  { %v1291_v22 = vadd.f32 1.0, %v1275_v60  ;;  %v1131_v20 = vadd.f32 4.3746643, %v1115_v21  ;;  %1983 = vrcp.f32 %v782_v55  ;;  %v639_v34 = vmul.f32 -54.476097, %v2508_v44 }
  0x8c   :  { %v1292_v48 = vadd.f32 1.0, %v1276_v16  ;;  %v1132_v32 = vadd.f32 4.3746643, %v1116_v57  ;;  %v463_v59 = vmul.f32 -39.69683, %v2508_v44  ;;  %v2528_v23 = vmul.f32 %v1976_v62, %v620_v56 }
  0x8d   :  { %1985 = vrcp.f32 %v1291_v22  ;;  %v640_v6 = vmul.f32 -54.476097, %v2523_v24  ;;  %vm923_vm4 = vcmp.eq.f32.partialorder %v2484_v10, inf  ;;  %v831_v4 = vsub.f32 1.0, %v2486_v17 }
  0x8e   :  { %1987 = vrcp.f32 %v1292_v48  ;;  %v1978_v54 = vpop.eup %1977  ;;  %v926_v45 = vand.u32 2147483648, %v2484_v10  ;;  %v464_v37 = vmul.f32 -39.69683, %v2523_v24  ;;  %v655_v40 = vadd.f32 161.58583, %v639_v34 }
  0x8f   :  { %v832_v42 = vsub.f32 1.0, %v416_v38  ;;  %v1147_v21 = vmul.f32 %v1131_v20, %v2466_v5  ;;  %v922_v53 = vmul.f32 %v1978_v54, %v2484_v10  ;;  %vm925_vm5 = vcmp.eq.f32.partialorder %v2484_v10, 0.0  ;;  %v1980_v55 = vpop.eup %1979 }
  0x90   :  { %vm930_vm6 = vcmp.eq.f32.partialorder %v2489_v19, inf  ;;  %v1148_v56 = vmul.f32 %v1132_v32, %v2473_v13  ;;  %v933_v60 = vand.u32 2147483648, %v2489_v19  ;;  %v479_v62 = vadd.f32 220.9461, %v463_v59 }
  0x91   :  { %v656_v57 = vadd.f32 161.58583, %v640_v6  ;;  %vm1308_vm8 = vcmp.lt.f32.partialorder %v2340_v47, 0.0  ;;  %vm1387_vm9 = vcmp.lt.f32.partialorder %v2346_v50, 0.02425  ;;  %v924_v5 = vsel %vm923_vm4, %v2484_v10, %v922_v53 }
  0x92   :  { %v929_v16 = vmul.f32 %v1980_v55, %v2489_v19  ;;  %vm932_vm10 = vcmp.eq.f32.partialorder %v2489_v19, 0.0  ;;  %v2549_v13 = vmin.f32 %v2486_v17, %v831_v4  ;;  %vm1388_vm11 = vcmp.lt.f32.partialorder %v2360_v58, 0.02425 }
  0x93   :  { %v2552_v22 = vsel %vm925_vm5, %v926_v45, %v924_v5  ;;  %v480_v20 = vadd.f32 220.9461, %v464_v37  ;;  %v671_v48 = vmul.f32 %v655_v40, %v2508_v44  ;;  %v2555_v34 = vmin.f32 %v416_v38, %v832_v42 }
  0x94   :  { %v1163_v32 = vadd.f32 2.938164, %v1147_v21  ;;  %v931_v10 = vsel %vm930_vm6, %v2489_v19, %v929_v16  ;;  %v1021_v59 = vmul.f32 -0.007784894, %v2552_v22  ;;  %v1181_v6 = vmul.f32 0.007784696, %v2552_v22  ;;  %v2562_v17 = vpop.eup %1981 }
  0x95   :  { %v1164_v4 = vadd.f32 2.938164, %v1148_v56  ;;  %v2564_v54 = vsel %vm932_vm10, %v933_v60, %v931_v10  ;;  %v495_v45 = vmul.f32 %v479_v62, %v2508_v44  ;;  %v672_v37 = vmul.f32 %v656_v57, %v2523_v24  ;;  %v2568_v38 = vpop.eup %1983 }
  0x96   :  { %v1022_v40 = vmul.f32 -0.007784894, %v2564_v54  ;;  %v1791_v42 = vadd.f32 -0.32239646, %v1021_v59  ;;  %v1182_v19 = vmul.f32 0.007784696, %v2564_v54  ;;  %1989 = vlog2.f32 %v2549_v13 }
  0x97   :  { %v1986_v21 = vpop.eup %1985  ;;  %v1197_v53 = vadd.f32 0.32246712, %v1181_v6  ;;  %v496_v55 = vmul.f32 %v480_v20, %v2523_v24  ;;  %v1761_v56 = vadd.f32 -155.69897, %v671_v48  ;;  %1991 = vlog2.f32 %v2555_v34 }
  0x98   :  { %v1988_v60 = vpop.eup %1987  ;;  %v1324_v62 = vmul.f32 %v1986_v21, %v1163_v32  ;;  %v1792_v5 = vadd.f32 -0.32239646, %v1022_v40  ;;  %v1053_v57 = vmul.f32 %v1791_v42, %v2552_v22  ;;  %v1198_v16 = vadd.f32 0.32246712, %v1182_v19 }
  0x99   :  { %v1326_v10 = vmul.f32 %v1988_v60, %v1164_v4  ;;  %v1213_v59 = vmul.f32 %v1197_v53, %v2552_v22  ;;  %v1729_v43 = vadd.f32 -275.9285, %v495_v45  ;;  %v1762_v15 = vadd.f32 -155.69897, %v672_v37 }
  0x9a   :  { %v1355_v0 = vsub.f32 0.0, %v1324_v62  ;;  %v1054_v1 = vmul.f32 %v1792_v5, %v2564_v54  ;;  %v1807_v6 = vadd.f32 -2.4007583, %v1053_v57  ;;  %v1214_v20 = vmul.f32 %v1198_v16, %v2564_v54 }
  0x9b   :  { %v1356_v48 = vsub.f32 0.0, %v1326_v10  ;;  %v1229_v27 = vadd.f32 2.4451342, %v1213_v59  ;;  %v1730_v26 = vadd.f32 -275.9285, %v496_v55  ;;  %v703_v32 = vmul.f32 %v1761_v56, %v2508_v44 }
  0x9c   :  { %v1371_v40 = vsel %vm1307_vm7, %v1324_v62, %v1355_v0  ;;  %v1808_v42 = vadd.f32 -2.4007583, %v1054_v1  ;;  %v1085_v4 = vmul.f32 %v1807_v6, %v2552_v22  ;;  %v1230_v19 = vadd.f32 2.4451342, %v1214_v20 }
  0x9d   :  { %v1372_v45 = vsel %vm1308_vm8, %v1326_v10, %v1356_v48  ;;  %v1403_v37 = vsel %vm1387_vm9, %v1371_v40, %v2519_v49  ;;  %v1245_v21 = vmul.f32 %v1229_v27, %v2552_v22  ;;  %v704_v53 = vmul.f32 %v1762_v15, %v2523_v24 }
  0x9e   :  { %v1404_v41 = vsel %vm1388_vm11, %v1372_v45, %v2528_v23  ;;  %v1531_v1 = vmul.f32 %v2377_v14, %v1403_v37  ;;  %v1086_v0 = vmul.f32 %v1808_v42, %v2564_v54  ;;  %v1823_v55 = vadd.f32 -2.5497324, %v1085_v4 }
  0x9f   :  { %v1532_v47 = vmul.f32 %v2386_v29, %v1404_v41  ;;  %v1246_v56 = vmul.f32 %v1230_v19, %v2564_v54  ;;  %v1261_v60 = vadd.f32 3.7544086, %v1245_v21  ;;  %v719_v50 = vadd.f32 66.801315, %v703_v32 }
  0xa0   :  { %v1990_v49 = vpop.eup %1989  ;;  %v3277_v27 = vunpack.c.l.bf16 %v2325_v12  ;;  %v1824_v15 = vadd.f32 -2.5497324, %v1086_v0  ;;  %v1117_v5 = vmul.f32 %v1823_v55, %v2552_v22  ;;  %v527_v58 = vmul.f32 %v1729_v43, %v2508_v44 }
  0xa1   :  { %v1992_v23 = vpop.eup %1991  ;;  %v3278_v14 = vunpack.c.h.bf16 %v2325_v12  ;;  %v605_v16 = vadd.f32 2.5066283, %v2513_v18  ;;  %v1262_v29 = vadd.f32 3.7544086, %v1246_v56  ;;  %v1277_v10 = vmul.f32 %v1261_v60, %v2552_v22 }
  0xa2   :  { %v1547_v62 = vadd.f32 %v3277_v27, %v1531_v1  ;;  %v606_v59 = vadd.f32 2.5066283, %v2516_v46  ;;  %v1118_v6 = vmul.f32 %v1824_v15, %v2564_v54  ;;  %v528_v20 = vmul.f32 %v1730_v26, %v2523_v24 }
  0xa3   :  { %v1548_v57 = vadd.f32 %v3278_v14, %v1532_v47  ;;  %v720_v48 = vadd.f32 66.801315, %v704_v53  ;;  %v1278_v40 = vmul.f32 %v1262_v29, %v2564_v54  ;;  %v1293_v43 = vadd.f32 1.0, %v1277_v10 }
  0xa4   :  { %v735_v42 = vmul.f32 %v719_v50, %v2508_v44  ;;  %v1133_v12 = vadd.f32 4.3746643, %v1117_v5  ;;  %v543_v4 = vadd.f32 138.35776, %v527_v58  ;;  %v868_v19 = vmul.f32 0.6931472, %v1990_v49 }
  0xa5   :  { %v1563_v32 = vpack.c.bf16 %v1548_v57, %v1547_v62  ;;  %1993 = vpow2.f32 %v2422_v63  ;;  %v1294_v18 = vadd.f32 1.0, %v1278_v40  ;;  %v736_v46 = vmul.f32 %v720_v48, %v2523_v24 }
  0xa6   :  { %1995 = vrcp.f32 %v1293_v43  ;;  %v870_v45 = vmul.f32 0.6931472, %v1992_v23  ;;  %v3279_v37 = vmov 0.0   ;;  %v1134_v26 = vadd.f32 4.3746643, %v1118_v6 }
  0xa7   :  { %1926 = vmatpush3.bf16.msra.mxu0 %v1563_v32  ;;  %v2613_v21 = vmul.f32 -2.0, %v868_v19  ;;  %v1477_v53 = vmul.f32 1.442695, %v2408_v35  ;;  %v3280_v41 = vmul.u32 2654435761, %v2411_v36  ;;  %1997 = vrcp.f32 %v1294_v18 }
  0xa8   :  { %1927 = vmatprep.subr.bf16.mxu0 %v3279_v37  ;;  %v544_v0 = vadd.f32 138.35776, %v528_v20  ;;  %v1777_v63 = vadd.f32 -13.280682, %v735_v42  ;;  %v2619_v55 = vmul.f32 -2.0, %v870_v45  ;;  %v621_v47 = vmul.f32 %v2349_v51, %v605_v16 }
  0xa9   :  { %v161_v1 = vadd.s32 %v2300_v11, %v3280_v41  ;;  %v1149_v56 = vmul.f32 %v1133_v12, %v2552_v22  ;;  %1999 = vrsqrt.f32 %v2613_v21  ;;  %v3281_v60 = vmul.u32 2654435761, %v2415_v28 }
  0xaa   :  { %v622_v35 = vmul.f32 %v2352_v52, %v606_v59  ;;  %v559_v36 = vmul.f32 %v543_v4, %v2508_v44  ;;  %v1778_v49 = vadd.f32 -13.280682, %v736_v46  ;;  %2001 = vrsqrt.f32 %v2619_v55 }
  0xab   :  { %v162_v50 = vadd.s32 %v2300_v11, %v3281_v60  ;;  %v1150_v27 = vmul.f32 %v1134_v26, %v2564_v54  ;;  %vm1309_vm12 = vcmp.lt.f32.partialorder %v2349_v51, 0.0  ;;  %v1877_v62 = vunpack.c.h.bf16 %v2329_v31 }
  0xac   :  { %2003 = vpow2.f32 %v1477_v53  ;;  %vm1310_vm13 = vcmp.lt.f32.partialorder %v2352_v52, 0.0  ;;  %vm1389_vm14 = vcmp.lt.f32.partialorder %v2432_v7, 0.02425  ;;  %v560_v28 = vmul.f32 %v544_v0, %v2523_v24 }
  0xad   :  { %v767_v22 = vmul.f32 %v1777_v63, %v2508_v44  ;;  %v800_v15 = vmul.f32 %v2562_v17, %v621_v47  ;;  %v1165_v5 = vadd.f32 2.938164, %v1149_v56  ;;  %vm1390_vm15 = vcmp.lt.f32.partialorder %v2438_v25, 0.02425 }
  0xae   :  { %v1651_v58 = vshrl.u32 %v161_v1, 16  ;;  %v1652_v54 = vshrl.u32 %v162_v50, 16  ;;  %v802_v23 = vmul.f32 %v2568_v38, %v622_v35  ;;  %v2640_v14 = vadd.f32 -30.664799, %v559_v36 }
  0xaf   :  { %v768_v57 = vmul.f32 %v1778_v49, %v2523_v24  ;;  %v113_v16 = vmul.u32 128, %v2320_v8  ;;  %v2644_v29 = vpop.eup %1993  ;;  %v1166_v10 = vadd.f32 2.938164, %v1150_v27  ;;  %v114_v17 = vmul.u32 128, %v2323_v9 }
  0xb0   :  { %v209_v59 = vxor.u32 %v1651_v58, %v161_v1  ;;  %v210_v6 = vxor.u32 %v1652_v54, %v162_v50  ;;  %v1996_v20 = vpop.eup %1995  ;;  %v2647_v48 = vadd.f32 -30.664799, %v560_v28  ;;  %v783_v32 = vadd.f32 1.0, %v767_v22 }
  0xb1   :  { %vm937_vm0 = vcmp.eq.f32.partialorder %v2613_v21, inf  ;;  %v129_v38 = vadd.s32 %v113_v16, %v2290_v3  ;;  %v1328_v40 = vmul.f32 %v1996_v20, %v1165_v5  ;;  %vm939_vm1 = vcmp.eq.f32.partialorder %v2613_v21, 0.0  ;;  %v1998_v42 = vpop.eup %1997 }
  0xb2   :  { %v225_v43 = vmul.u32 2246822507, %v209_v59  ;;  %v226_v8 = vmul.u32 2246822507, %v210_v6  ;;  %v2652_v12 = vadd.f32 1.0, %v768_v57  ;;  %v940_v4 = vand.u32 2147483648, %v2613_v21 }
  0xb3   :  { %vm944_vm2 = vcmp.eq.f32.partialorder %v2619_v55, inf  ;;  %v130_v9 = vadd.s32 %v114_v17, %v2290_v3  ;;  %v2000_v19 = vpop.eup %1999  ;;  %v1330_v18 = vmul.f32 %v1998_v42, %v1166_v10  ;;  %v1357_v46 = vsub.f32 0.0, %v1328_v40 }
  0xb4   :  { %v1667_v45 = vshrl.u32 %v225_v43, 13  ;;  %v1668_v26 = vshrl.u32 %v226_v8, 13  ;;  %v2002_v53 = vpop.eup %2001  ;;  %v936_v41 = vmul.f32 %v2000_v19, %v2613_v21  ;;  %vm946_vm3 = vcmp.eq.f32.partialorder %v2619_v55, 0.0 }
  0xb5   :  { %v947_v1 = vand.u32 2147483648, %v2619_v55  ;;  %v145_v0 = vmul.u32 2654435761, %v129_v38  ;;  %v1358_v47 = vsub.f32 0.0, %v1330_v18  ;;  %v1373_v56 = vsel %vm1309_vm12, %v1328_v40, %v1357_v46 }
  0xb6   :  { %v2660_v63 = vpop.eup %2003  ;;  %2005 = vrcp.f32 %v783_v32  ;;  %v943_v60 = vmul.f32 %v2002_v53, %v2619_v55  ;;  %v1405_v50 = vsel %vm1389_vm14, %v1373_v56, %v800_v15  ;;  %v938_v35 = vsel %vm937_vm0, %v2613_v21, %v936_v41 }
  0xb7   :  { %v273_v36 = vxor.u32 %v1667_v45, %v225_v43  ;;  %v146_v49 = vmul.u32 2654435761, %v130_v9  ;;  %v1374_v27 = vsel %vm1310_vm13, %v1330_v18, %v1358_v47  ;;  %v1533_v28 = vmul.f32 %v2390_v39, %v1405_v50 }
  0xb8   :  { %v2675_v51 = vsel %vm939_vm1, %v940_v4, %v938_v35  ;;  %v274_v22 = vxor.u32 %v1668_v26, %v226_v8  ;;  %v1406_v7 = vsel %vm1390_vm15, %v1374_v27, %v802_v23  ;;  %v945_v15 = vsel %vm944_vm2, %v2619_v55, %v943_v60 }
  0xb9   :  { %v1023_v5 = vmul.f32 -0.007784894, %v2675_v51  ;;  %v163_v58 = vadd.s32 %v2300_v11, %v145_v0  ;;  %v1534_v52 = vmul.f32 %v2459_v61, %v1406_v7  ;;  %v3282_v39 = vunpack.c.l.bf16 %v2329_v31 }
  0xba   :  { %v2689_v21 = vsel %vm946_vm3, %v947_v1, %v945_v15  ;;  %v1183_v25 = vmul.f32 0.007784696, %v2675_v51  ;;  %v164_v10 = vadd.s32 %v2300_v11, %v146_v49  ;;  %v289_v6 = vmul.u32 3266489909, %v273_v36 }
  0xbb   :  { %v1549_v54 = vadd.f32 %v3282_v39, %v1533_v28  ;;  %v1024_v23 = vmul.f32 -0.007784894, %v2689_v21  ;;  %v1793_v57 = vadd.f32 -0.32239646, %v1023_v5  ;;  %v1184_v16 = vmul.f32 0.007784696, %v2689_v21 }
  0xbc   :  { %v1550_v59 = vadd.f32 %v1877_v62, %v1534_v52  ;;  %v1199_v61 = vadd.f32 0.32246712, %v1183_v25  ;;  %v290_v17 = vmul.u32 3266489909, %v274_v22  ;;  %v1653_v38 = vshrl.u32 %v163_v58, 16 }
  0xbd   :  { %v1794_v20 = vadd.f32 -0.32239646, %v1024_v23  ;;  %v1055_v55 = vmul.f32 %v1793_v57, %v2675_v51  ;;  %v1200_v32 = vadd.f32 0.32246712, %v1184_v16  ;;  %v1683_v8 = vshrl.u32 %v289_v6, 16 }
  0xbe   :  { %v1564_v40 = vpack.c.bf16 %v1550_v59, %v1549_v54  ;;  %v1215_v43 = vmul.f32 %v1199_v61, %v2675_v51  ;;  %v1684_v42 = vshrl.u32 %v290_v17, 16  ;;  %v1654_v31 = vshrl.u32 %v164_v10, 16 }
  0xbf   :  { %v1056_v4 = vmul.f32 %v1794_v20, %v2689_v21  ;;  %v1809_v9 = vadd.f32 -2.4007583, %v1055_v55  ;;  %v1216_v19 = vmul.f32 %v1200_v32, %v2689_v21  ;;  %v337_v46 = vxor.u32 %v1683_v8, %v289_v6 }
  0xc0   :  { %v2701_v62 = vpop.eup %2005  ;;  %1928 = vmatpush3.bf16.msra.mxu0 %v1564_v40  ;;  %v1231_v18 = vadd.f32 2.4451342, %v1215_v43  ;;  %v338_v45 = vxor.u32 %v1684_v42, %v290_v17  ;;  %v211_v26 = vxor.u32 %v1653_v38, %v163_v58  ;;  %v212_v0 = vxor.u32 %v1654_v31, %v164_v10 }
  0xc1   :  { %1929 = vmatprep.subr.bf16.mxu0 %v3279_v37  ;;  %v1810_v53 = vadd.f32 -2.4007583, %v1056_v4  ;;  %v1087_v41 = vmul.f32 %v1809_v9, %v2675_v51  ;;  %v1232_v1 = vadd.f32 2.4451342, %v1216_v19  ;;  %v1699_v56 = vshrl.u32 %v337_v46, 8 }
  0xc2   :  { %v1247_v47 = vmul.f32 %v1231_v18, %v2675_v51  ;;  %v1700_v60 = vshrl.u32 %v338_v45, 8  ;;  %v227_v50 = vmul.u32 2246822507, %v211_v26  ;;  %v228_v27 = vmul.u32 2246822507, %v212_v0 }
  0xc3   :  { %v1088_v35 = vmul.f32 %v1810_v53, %v2689_v21  ;;  %v1825_v36 = vadd.f32 -2.5497324, %v1087_v41  ;;  %v1248_v49 = vmul.f32 %v1232_v1, %v2689_v21  ;;  %v385_v22 = vcvt.s32.f32 %v1699_v56  ;;  %v1910_v41 = vld [vmem:[#allocation8 + $0x10] sm:$0xff]  }
  0xc4   :  { %v1263_v28 = vadd.f32 3.7544086, %v1247_v47  ;;  %v386_v7 = vcvt.s32.f32 %v1700_v60  ;;  %v1669_v15 = vshrl.u32 %v227_v50, 13  ;;  %v1670_v39 = vshrl.u32 %v228_v27, 13 }
  0xc5   :  { %v1826_v5 = vadd.f32 -2.5497324, %v1088_v35  ;;  %v1119_v58 = vmul.f32 %v1825_v36, %v2675_v51  ;;  %v1264_v52 = vadd.f32 3.7544086, %v1248_v49  ;;  %v401_v25 = vadd.f32 0.5, %v385_v22 }
  0xc6   :  { %v1279_v54 = vmul.f32 %v1263_v28, %v2675_v51  ;;  %v402_v23 = vadd.f32 0.5, %v386_v7  ;;  %v275_v57 = vxor.u32 %v1669_v15, %v227_v50  ;;  %v591_v16 = vmul.f32 %v2640_v14, %v2508_v44 }
  0xc7   :  { %2007 = vrcp.f32 %v2652_v12  ;;  %v1120_v10 = vmul.f32 %v1826_v5, %v2689_v21  ;;  %v1280_v59 = vmul.f32 %v1264_v52, %v2689_v21  ;;  %v1135_v61 = vadd.f32 4.3746643, %v1119_v58 }
  0xc8   :  { %v1295_v6 = vadd.f32 1.0, %v1279_v54  ;;  %v417_v17 = vmul.f32 5.9604645e-08, %v401_v25  ;;  %v418_v20 = vmul.f32 5.9604645e-08, %v402_v23  ;;  %v276_v38 = vxor.u32 %v1670_v39, %v228_v27 }
  0xc9   :  { %v1136_v55 = vadd.f32 4.3746643, %v1120_v10  ;;  %v1296_v32 = vadd.f32 1.0, %v1280_v59  ;;  %v291_v40 = vmul.u32 3266489909, %v275_v57  ;;  %v592_v14 = vmul.f32 %v2647_v48, %v2523_v24  ;;  %v1904_v10 = vld [vmem:[#allocation10 + $0x18] sm:$0xff]  }
  0xca   :  { %2009 = vrcp.f32 %v1295_v6  ;;  %v2715_v43 = vadd.f32 -0.5, %v417_v17  ;;  %v2717_v8 = vadd.f32 -0.5, %v418_v20  ;;  %v833_v44 = vsub.f32 1.0, %v417_v17 }
  0xcb   :  { %v607_v12 = vadd.f32 2.5066283, %v591_v16  ;;  %2011 = vrcp.f32 %v1296_v32  ;;  %v834_v42 = vsub.f32 1.0, %v418_v20  ;;  %v1151_v4 = vmul.f32 %v1135_v61, %v2675_v51 }
  0xcc   :  { %v2724_v9 = vmul.f32 %v2715_v43, %v2715_v43  ;;  %v2728_v19 = vmul.f32 %v2717_v8, %v2717_v8  ;;  %v2730_v31 = vmin.f32 %v417_v17, %v833_v44  ;;  %v1152_v18 = vmul.f32 %v1136_v55, %v2689_v21 }
  0xcd   :  { %v2733_v46 = vmin.f32 %v418_v20, %v834_v42  ;;  %v292_v24 = vmul.u32 3266489909, %v276_v38  ;;  %v1685_v48 = vshrl.u32 %v291_v40, 16  ;;  %v608_v53 = vadd.f32 2.5066283, %v592_v14 }
  0xce   :  { %v465_v45 = vmul.f32 -39.69683, %v2724_v9  ;;  %v466_v51 = vmul.f32 -39.69683, %v2728_v19  ;;  %v641_v26 = vmul.f32 -54.476097, %v2724_v9  ;;  %2013 = vlog2.f32 %v2730_v31 }
  0xcf   :  { %v642_v1 = vmul.f32 -54.476097, %v2728_v19  ;;  %2015 = vlog2.f32 %v2733_v46  ;;  %v623_v60 = vmul.f32 %v2495_v30, %v607_v12  ;;  %v1167_v50 = vadd.f32 2.938164, %v1151_v4 }
  0xd0   :  { %v481_v0 = vadd.f32 220.9461, %v465_v45  ;;  %v482_v21 = vadd.f32 220.9461, %v466_v51  ;;  %v657_v47 = vadd.f32 161.58583, %v641_v26  ;;  %v339_v22 = vxor.u32 %v1685_v48, %v291_v40 }
  0xd1   :  { %v2008_v56 = vpop.eup %2007  ;;  %v1168_v35 = vadd.f32 2.938164, %v1152_v18  ;;  %v658_v36 = vadd.f32 161.58583, %v642_v1  ;;  %v1686_v28 = vshrl.u32 %v292_v24, 16  ;;  %v624_v7 = vmul.f32 %v2504_v33, %v608_v53 }
  0xd2   :  { %v497_v49 = vmul.f32 %v481_v0, %v2724_v9  ;;  %v498_v27 = vmul.f32 %v482_v21, %v2728_v19  ;;  %v673_v15 = vmul.f32 %v657_v47, %v2724_v9  ;;  %v1880_v52 = vunpack.c.l.bf16 %v1910_v41 }
  0xd3   :  { %v674_v5 = vmul.f32 %v658_v36, %v2728_v19  ;;  %vm1311_vm4 = vcmp.lt.f32.partialorder %v2495_v30, 0.0  ;;  %vm1312_vm5 = vcmp.lt.f32.partialorder %v2504_v33, 0.0  ;;  %vm1391_vm6 = vcmp.lt.f32.partialorder %v2549_v13, 0.02425  ;;  %v2769_v36 = vld [vmem:[#allocation10 + $0x20] sm:$0xff]  }
  0xd4   :  { %v2010_v58 = vpop.eup %2009  ;;  %v1731_v39 = vadd.f32 -275.9285, %v497_v49  ;;  %v1732_v54 = vadd.f32 -275.9285, %v498_v27  ;;  %v804_v57 = vmul.f32 %v2701_v62, %v623_v60  ;;  %v340_v59 = vxor.u32 %v1686_v28, %v292_v24 }
  0xd5   :  { %v2012_v25 = vpop.eup %2011  ;;  %v1332_v23 = vmul.f32 %v2010_v58, %v1167_v50  ;;  %v1701_v61 = vshrl.u32 %v339_v22, 8  ;;  %v806_v6 = vmul.f32 %v2008_v56, %v624_v7  ;;  %v1763_v20 = vadd.f32 -155.69897, %v673_v15  ;;  %v2774_v7 = vld [vmem:[#allocation8 + $0x18] sm:$0xff]  }
  0xd6   :  { %v1334_v16 = vmul.f32 %v2012_v25, %v1168_v35  ;;  %v1764_v55 = vadd.f32 -155.69897, %v674_v5  ;;  %vm1392_vm7 = vcmp.lt.f32.partialorder %v2555_v34, 0.02425  ;;  %v529_v40 = vmul.f32 %v1731_v39, %v2724_v9 }
  0xd7   :  { %v1359_v17 = vsub.f32 0.0, %v1332_v23  ;;  %v530_v44 = vmul.f32 %v1732_v54, %v2728_v19  ;;  %v1881_v12 = vunpack.c.h.bf16 %v1910_v41  ;;  %v1852_v4 = vunpack.c.l.bf16 %v1904_v10 }
  0xd8   :  { %v2014_v32 = vpop.eup %2013  ;;  %v1360_v38 = vsub.f32 0.0, %v1334_v16  ;;  %v1702_v48 = vshrl.u32 %v340_v59, 8  ;;  %v387_v45 = vcvt.s32.f32 %v1701_v61  ;;  %v705_v26 = vmul.f32 %v1763_v20, %v2724_v9 }
  0xd9   :  { %v2016_v14 = vpop.eup %2015  ;;  %v1375_v62 = vsel %vm1311_vm4, %v1332_v23, %v1359_v17  ;;  %v872_v42 = vmul.f32 0.6931472, %v2014_v32  ;;  %v706_v53 = vmul.f32 %v1764_v55, %v2728_v19  ;;  %v545_v41 = vadd.f32 138.35776, %v529_v40 }
  0xda   :  { %v1376_v18 = vsel %vm1312_vm5, %v1334_v16, %v1360_v38  ;;  %v1407_v24 = vsel %vm1391_vm6, %v1375_v62, %v804_v57  ;;  %v546_v1 = vadd.f32 138.35776, %v530_v44  ;;  %v874_v0 = vmul.f32 0.6931472, %v2016_v14 }
  0xdb   :  { %v1408_v34 = vsel %vm1392_vm7, %v1376_v18, %v806_v6  ;;  %v1535_v51 = vmul.f32 %v2644_v29, %v1407_v24  ;;  %v2764_v33 = vmul.f32 -2.0, %v872_v42  ;;  %v1853_v56 = vunpack.c.h.bf16 %v1904_v10 }
  0xdc   :  { %v1536_v30 = vmul.f32 %v2660_v63, %v1408_v34  ;;  %v2766_v13 = vmul.f32 -2.0, %v874_v0  ;;  %v1457_v60 = vmul.f32 0.5, %v1852_v4  ;;  %v721_v50 = vadd.f32 66.801315, %v705_v26 }
  0xdd   :  { %v1551_v21 = vadd.f32 %v1880_v52, %v1535_v51  ;;  %2017 = vrsqrt.f32 %v2764_v33  ;;  %v388_v29 = vcvt.s32.f32 %v1702_v48  ;;  %v403_v35 = vadd.f32 0.5, %v387_v45 }
  0xde   :  { %v1552_v47 = vadd.f32 %v1881_v12, %v1536_v30  ;;  %v561_v63 = vmul.f32 %v545_v41, %v2724_v9  ;;  %v562_v27 = vmul.f32 %v546_v1, %v2728_v19  ;;  %v722_v28 = vadd.f32 66.801315, %v706_v53 }
  0xdf   :  { %2019 = vrsqrt.f32 %v2766_v13  ;;  %v1458_v22 = vmul.f32 0.5, %v1853_v56  ;;  %v1856_v15 = vunpack.c.l.bf16 %v2769_v36  ;;  %v737_v5 = vmul.f32 %v721_v50, %v2724_v9 }
  0xe0   :  { %v1565_v49 = vpack.c.bf16 %v1552_v47, %v1551_v21  ;;  %v1479_v58 = vmul.f32 1.442695, %v1457_v60  ;;  %v404_v52 = vadd.f32 0.5, %v388_v29  ;;  %v419_v39 = vmul.f32 5.9604645e-08, %v403_v35 }
  0xe1   :  { %v1747_v54 = vadd.f32 -30.664799, %v561_v63  ;;  %v1748_v25 = vadd.f32 -30.664799, %v562_v27  ;;  %v738_v23 = vmul.f32 %v722_v28, %v2728_v19  ;;  %v1884_v57 = vunpack.c.l.bf16 %v2774_v7 }
  0xe2   :  { %1930 = vmatpush3.bf16.msra.mxu0 %v1565_v49  ;;  %v420_v16 = vmul.f32 5.9604645e-08, %v404_v52  ;;  %v2781_v10 = vadd.f32 -0.5, %v419_v39  ;;  %v2783_v59 = vmul.f32 1.442695, %v1458_v22  ;;  %v1885_v61 = vunpack.c.h.bf16 %v2774_v7 }
  0xe3   :  { %1931 = vmatprep.subr.bf16.mxu0 %v3279_v37  ;;  %v1857_v6 = vunpack.c.h.bf16 %v2769_v36  ;;  %v2787_v17 = vmul.f32 0.5, %v1856_v15  ;;  %v1779_v20 = vadd.f32 -13.280682, %v737_v5  ;;  %2021 = vpow2.f32 %v1479_v58 }
  0xe4   :  { %v2789_v55 = vadd.f32 -0.5, %v420_v16  ;;  %v2793_v32 = vmul.f32 %v2781_v10, %v2781_v10  ;;  %v2796_v38 = vmul.f32 %v1747_v54, %v2724_v9  ;;  %v2799_v40 = vmul.f32 %v1748_v25, %v2728_v19 }
  0xe5   :  { %v1780_v44 = vadd.f32 -13.280682, %v738_v23  ;;  %vm951_vm8 = vcmp.eq.f32.partialorder %v2764_v33, inf  ;;  %v954_v62 = vand.u32 2147483648, %v2764_v33  ;;  %v835_v4 = vsub.f32 1.0, %v419_v39 }
  0xe6   :  { %v2805_v12 = vmul.f32 %v2789_v55, %v2789_v55  ;;  %v643_v42 = vmul.f32 -54.476097, %v2793_v32  ;;  %vm953_vm9 = vcmp.eq.f32.partialorder %v2764_v33, 0.0  ;;  %vm958_vm10 = vcmp.eq.f32.partialorder %v2766_v13, inf }
  0xe7   :  { %v2018_v14 = vpop.eup %2017  ;;  %v467_v24 = vmul.f32 -39.69683, %v2793_v32  ;;  %v961_v45 = vand.u32 2147483648, %v2766_v13  ;;  %v836_v26 = vsub.f32 1.0, %v420_v16  ;;  %vm960_vm11 = vcmp.eq.f32.partialorder %v2766_v13, 0.0 }
  0xe8   :  { %v950_v18 = vmul.f32 %v2018_v14, %v2764_v33  ;;  %v468_v34 = vmul.f32 -39.69683, %v2805_v12  ;;  %v644_v51 = vmul.f32 -54.476097, %v2805_v12  ;;  %v659_v41 = vadd.f32 161.58583, %v643_v42 }
  0xe9   :  { %v2020_v48 = vpop.eup %2019  ;;  %v769_v1 = vmul.f32 %v1779_v20, %v2724_v9  ;;  %v770_v0 = vmul.f32 %v1780_v44, %v2728_v19  ;;  %v2822_v47 = vmin.f32 %v419_v39, %v835_v4  ;;  %v2829_v63 = vmin.f32 %v420_v16, %v836_v26 }
  0xea   :  { %v952_v53 = vsel %vm951_vm8, %v2764_v33, %v950_v18  ;;  %v957_v30 = vmul.f32 %v2020_v48, %v2766_v13  ;;  %v483_v33 = vadd.f32 220.9461, %v467_v24  ;;  %v484_v35 = vadd.f32 220.9461, %v468_v34 }
  0xeb   :  { %v2820_v21 = vsel %vm953_vm9, %v954_v62, %v952_v53  ;;  %v660_v49 = vadd.f32 161.58583, %v644_v51  ;;  %v675_v28 = vmul.f32 %v659_v41, %v2793_v32  ;;  %v786_v15 = vadd.f32 1.0, %v770_v0 }
  0xec   :  { %v959_v56 = vsel %vm958_vm10, %v2766_v13, %v957_v30  ;;  %v1025_v60 = vmul.f32 -0.007784894, %v2820_v21  ;;  %v1185_v50 = vmul.f32 0.007784696, %v2820_v21  ;;  %v785_v13 = vadd.f32 1.0, %v769_v1 }
  0xed   :  { %v2827_v29 = vsel %vm960_vm11, %v961_v45, %v959_v56  ;;  %v2834_v22 = vpop.eup %2021  ;;  %2023 = vlog2.f32 %v2822_v47  ;;  %v499_v54 = vmul.f32 %v483_v33, %v2793_v32  ;;  %v500_v23 = vmul.f32 %v484_v35, %v2805_v12 }
  0xee   :  { %v1026_v9 = vmul.f32 -0.007784894, %v2827_v29  ;;  %v1795_v19 = vadd.f32 -0.32239646, %v1025_v60  ;;  %v1186_v27 = vmul.f32 0.007784696, %v2827_v29  ;;  %v676_v16 = vmul.f32 %v660_v49, %v2805_v12 }
  0xef   :  { %v1201_v5 = vadd.f32 0.32246712, %v1185_v50  ;;  %2025 = vlog2.f32 %v2829_v63  ;;  %v1765_v62 = vadd.f32 -155.69897, %v675_v28  ;;  %v76_v4 = vadd.s32 80, %v2288_v2 }
  0xf0   :  { %v1796_v58 = vadd.f32 -0.32239646, %v1026_v9  ;;  %v1057_v52 = vmul.f32 %v1795_v19, %v2820_v21  ;;  %v1202_v39 = vadd.f32 0.32246712, %v1186_v27  ;;  %2027 = vrcp.f32 %v785_v13 }
  0xf1   :  { %v1217_v25 = vmul.f32 %v1201_v5, %v2820_v21  ;;  %v77_v18 = vadd.s32 88, %v2288_v2  ;;  %v1733_v34 = vadd.f32 -275.9285, %v499_v54  ;;  %2029 = vrcp.f32 %v786_v15 }
  0xf2   :  { %v1058_v20 = vmul.f32 %v1796_v58, %v2827_v29  ;;  %v1811_v44 = vadd.f32 -2.4007583, %v1057_v52  ;;  %v1218_v14 = vmul.f32 %v1202_v39, %v2827_v29  ;;  %v1734_v26 = vadd.f32 -275.9285, %v500_v23 }
  0xf3   :  { %v1233_v42 = vadd.f32 2.4451342, %v1217_v25  ;;  %v1766_v53 = vadd.f32 -155.69897, %v676_v16  ;;  %v707_v0 = vmul.f32 %v1765_v62, %v2793_v32  ;;  %v609_v56 = vadd.f32 2.5066283, %v2796_v38 }
  0xf4   :  { %v1812_v24 = vadd.f32 -2.4007583, %v1058_v20  ;;  %v1089_v48 = vmul.f32 %v1811_v44, %v2820_v21  ;;  %v1234_v45 = vadd.f32 2.4451342, %v1218_v14  ;;  %v115_v50 = vmul.u32 128, %v76_v4 }
  0xf5   :  { %v1249_v51 = vmul.f32 %v1233_v42, %v2820_v21  ;;  %v116_v33 = vmul.u32 128, %v77_v18  ;;  %v531_v19 = vmul.f32 %v1733_v34, %v2793_v32  ;;  %2031 = vpow2.f32 %v2783_v59 }
  0xf6   :  { %v1090_v30 = vmul.f32 %v1812_v24, %v2827_v29  ;;  %v1827_v41 = vadd.f32 -2.5497324, %v1089_v48  ;;  %v1250_v1 = vmul.f32 %v1234_v45, %v2827_v29  ;;  %v532_v13 = vmul.f32 %v1734_v26, %v2805_v12 }
  0xf7   :  { %v1265_v60 = vadd.f32 3.7544086, %v1249_v51  ;;  %v2024_v27 = vpop.eup %2023  ;;  %v1460_v15 = vmul.f32 0.5, %v1857_v6  ;;  %v708_v58 = vmul.f32 %v1766_v53, %v2805_v12  ;;  %v723_v52 = vadd.f32 66.801315, %v707_v0 }
  0xf8   :  { %v1828_v35 = vadd.f32 -2.5497324, %v1090_v30  ;;  %v1121_v49 = vmul.f32 %v1827_v41, %v2820_v21  ;;  %v1266_v9 = vadd.f32 3.7544086, %v1250_v1  ;;  %v610_v54 = vadd.f32 2.5066283, %v2799_v40 }
  0xf9   :  { %v1281_v28 = vmul.f32 %v1265_v60, %v2820_v21  ;;  %v2026_v39 = vpop.eup %2025  ;;  %v131_v23 = vadd.s32 %v115_v50, %v2290_v3  ;;  %v132_v59 = vadd.s32 %v116_v33, %v2290_v3  ;;  %v625_v16 = vmul.f32 %v2715_v43, %v609_v56 }
  0xfa   :  { %v1122_v38 = vmul.f32 %v1828_v35, %v2827_v29  ;;  %v1282_v5 = vmul.f32 %v1266_v9, %v2827_v29  ;;  %v1137_v20 = vadd.f32 4.3746643, %v1121_v49  ;;  %v547_v6 = vadd.f32 138.35776, %v531_v19  ;;  %v2028_v44 = vpop.eup %2027 }
  0xfb   :  { %v1297_v25 = vadd.f32 1.0, %v1281_v28  ;;  %v548_v62 = vadd.f32 138.35776, %v532_v13  ;;  %v876_v42 = vmul.f32 0.6931472, %v2024_v27  ;;  %v739_v18 = vmul.f32 %v723_v52, %v2793_v32  ;;  %v2030_v24 = vpop.eup %2029 }
  0xfc   :  { %v1298_v36 = vadd.f32 1.0, %v1282_v5  ;;  %v1138_v14 = vadd.f32 4.3746643, %v1122_v38  ;;  %v724_v4 = vadd.f32 66.801315, %v708_v58  ;;  %v626_v48 = vmul.f32 %v2717_v8, %v610_v54 }
  0xfd   :  { %2033 = vrcp.f32 %v1297_v25  ;;  %v878_v40 = vmul.f32 0.6931472, %v2026_v39  ;;  %v2869_v45 = vmul.f32 -2.0, %v876_v42  ;;  %v147_v34 = vmul.u32 2654435761, %v131_v23 }
  0xfe   :  { %2035 = vrcp.f32 %v1298_v36  ;;  %v148_v51 = vmul.u32 2654435761, %v132_v59  ;;  %v1153_v26 = vmul.f32 %v1137_v20, %v2820_v21  ;;  %v563_v53 = vmul.f32 %v547_v6, %v2793_v32 }
  0xff   :  { %v2873_v30 = vmul.f32 -2.0, %v878_v40  ;;  %v78_v41 = vadd.s32 96, %v2288_v2  ;;  %v1154_v1 = vmul.f32 %v1138_v14, %v2827_v29  ;;  %vm1313_vm12 = vcmp.lt.f32.partialorder %v2715_v43, 0.0  ;;  %v2032_v29 = vpop.eup %2031 }
 0x100   :  { %v564_v0 = vmul.f32 %v548_v62, %v2805_v12  ;;  %2037 = vrsqrt.f32 %v2869_v45  ;;  %v2881_v56 = vmul.f32 1.442695, %v2787_v17  ;;  %vm1314_vm13 = vcmp.lt.f32.partialorder %v2717_v8, 0.0 }
 0x101   :  { %vm1393_vm14 = vcmp.lt.f32.partialorder %v2730_v31, 0.02425  ;;  %v740_v21 = vmul.f32 %v724_v4, %v2805_v12  ;;  %v1781_v60 = vadd.f32 -13.280682, %v739_v18  ;;  %2039 = vrsqrt.f32 %v2873_v30 }
 0x102   :  { %v2887_v50 = vmul.f32 1.442695, %v1460_v15  ;;  %v808_v33 = vmul.f32 %v2028_v44, %v625_v16  ;;  %v810_v35 = vmul.f32 %v2030_v24, %v626_v48  ;;  %vm1394_vm15 = vcmp.lt.f32.partialorder %v2733_v46, 0.02425 }
 0x103   :  { %v165_v49 = vadd.s32 %v2300_v11, %v147_v34  ;;  %v166_v17 = vadd.s32 %v2300_v11, %v148_v51  ;;  %v1169_v9 = vadd.f32 2.938164, %v1153_v26  ;;  %v2892_v19 = vadd.f32 -30.664799, %v563_v53 }
 0x104   :  { %v79_v27 = vadd.s32 104, %v2288_v2  ;;  %v117_v28 = vmul.u32 128, %v78_v41  ;;  %v1170_v13 = vadd.f32 2.938164, %v1154_v1  ;;  %v2895_v38 = vadd.f32 -30.664799, %v564_v0 }
 0x105   :  { %v1655_v15 = vshrl.u32 %v165_v49, 16  ;;  %v1656_v5 = vshrl.u32 %v166_v17, 16  ;;  %v1782_v58 = vadd.f32 -13.280682, %v740_v21  ;;  %v2898_v52 = vmul.f32 %v1781_v60, %v2793_v32 }
 0x106   :  { %v118_v39 = vmul.u32 128, %v79_v27  ;;  %v133_v54 = vadd.s32 %v117_v28, %v2290_v3  ;;  %vm965_vm0 = vcmp.eq.f32.partialorder %v2869_v45, inf  ;;  %vm967_vm1 = vcmp.eq.f32.partialorder %v2869_v45, 0.0 }
 0x107   :  { %v2034_v25 = vpop.eup %2033  ;;  %v213_v23 = vxor.u32 %v1655_v15, %v165_v49  ;;  %v214_v59 = vxor.u32 %v1656_v5, %v166_v17  ;;  %v968_v36 = vand.u32 2147483648, %v2869_v45  ;;  %vm972_vm2 = vcmp.eq.f32.partialorder %v2873_v30, inf }
 0x108   :  { %v2036_v16 = vpop.eup %2035  ;;  %v1336_v20 = vmul.f32 %v2034_v25, %v1169_v9  ;;  %v134_v6 = vadd.s32 %v118_v39, %v2290_v3  ;;  %v149_v44 = vmul.u32 2654435761, %v133_v54  ;;  %vm974_vm3 = vcmp.eq.f32.partialorder %v2873_v30, 0.0 }
 0x109   :  { %v1338_v14 = vmul.f32 %v2036_v16, %v1170_v13  ;;  %v229_v62 = vmul.u32 2246822507, %v213_v23  ;;  %v230_v42 = vmul.u32 2246822507, %v214_v59  ;;  %v975_v34 = vand.u32 2147483648, %v2873_v30 }
 0x10a   :  { %v1361_v4 = vsub.f32 0.0, %v1336_v20  ;;  %v150_v18 = vmul.u32 2654435761, %v134_v6  ;;  %v167_v40 = vadd.s32 %v2300_v11, %v149_v44  ;;  %v2038_v24 = vpop.eup %2037  ;;  %v772_v25 = vmul.f32 %v1782_v58, %v2805_v12 }
 0x10b   :  { %v1362_v48 = vsub.f32 0.0, %v1338_v14  ;;  %v1671_v51 = vshrl.u32 %v229_v62, 13  ;;  %v1672_v26 = vshrl.u32 %v230_v42, 13  ;;  %v2040_v53 = vpop.eup %2039  ;;  %v964_v1 = vmul.f32 %v2038_v24, %v2869_v45 }
 0x10c   :  { %v1377_v41 = vsel %vm1313_vm12, %v1336_v20, %v1361_v4  ;;  %v168_v0 = vadd.s32 %v2300_v11, %v150_v18  ;;  %v1657_v21 = vshrl.u32 %v167_v40, 16  ;;  %v971_v17 = vmul.f32 %v2040_v53, %v2873_v30 }
 0x10d   :  { %v1378_v60 = vsel %vm1314_vm13, %v1338_v14, %v1362_v48  ;;  %v1409_v49 = vsel %vm1393_vm14, %v1377_v41, %v808_v33  ;;  %v277_v9 = vxor.u32 %v1671_v51, %v229_v62  ;;  %v966_v28 = vsel %vm965_vm0, %v2869_v45, %v964_v1 }
 0x10e   :  { %v1410_v27 = vsel %vm1394_vm15, %v1378_v60, %v810_v35  ;;  %v1537_v43 = vmul.f32 %v2834_v22, %v1409_v49  ;;  %v278_v13 = vxor.u32 %v1672_v26, %v230_v42  ;;  %v2926_v8 = vsel %vm967_vm1, %v968_v36, %v966_v28 }
 0x10f   :  { %v1538_v15 = vmul.f32 %v2032_v29, %v1410_v27  ;;  %v973_v31 = vsel %vm972_vm2, %v2873_v30, %v971_v17  ;;  %v293_v33 = vmul.u32 3266489909, %v277_v9  ;;  %v1027_v35 = vmul.f32 -0.007784894, %v2926_v8 }
 0x110   :  { %v1553_v46 = vadd.f32 %v1884_v57, %v1537_v43  ;;  %v2935_v22 = vsel %vm974_vm3, %v975_v34, %v973_v31  ;;  %v1187_v29 = vmul.f32 0.007784696, %v2926_v8  ;;  %v294_v54 = vmul.u32 3266489909, %v278_v13 }
 0x111   :  { %v1554_v45 = vadd.f32 %v1885_v61, %v1538_v15  ;;  %v1028_v5 = vmul.f32 -0.007784894, %v2935_v22  ;;  %v1188_v39 = vmul.f32 0.007784696, %v2935_v22  ;;  %v1797_v23 = vadd.f32 -0.32239646, %v1027_v35 }
 0x112   :  { %v1203_v57 = vadd.f32 0.32246712, %v1187_v29  ;;  %v1687_v59 = vshrl.u32 %v293_v33, 16  ;;  %v1688_v36 = vshrl.u32 %v294_v54, 16  ;;  %v1658_v61 = vshrl.u32 %v168_v0, 16 }
 0x113   :  { %v1566_v30 = vpack.c.bf16 %v1554_v45, %v1553_v46  ;;  %v1798_v16 = vadd.f32 -0.32239646, %v1028_v5  ;;  %v1204_v20 = vadd.f32 0.32246712, %v1188_v39  ;;  %v1059_v6 = vmul.f32 %v1797_v23, %v2926_v8 }
 0x114   :  { %v1219_v44 = vmul.f32 %v1203_v57, %v2926_v8  ;;  %v341_v7 = vxor.u32 %v1687_v59, %v293_v33  ;;  %v342_v42 = vxor.u32 %v1688_v36, %v294_v54  ;;  %v215_v58 = vxor.u32 %v1657_v21, %v167_v40 }
 0x115   :  { %1932 = vmatpush3.bf16.msra.mxu0 %v1566_v30  ;;  %v1060_v14 = vmul.f32 %v1798_v16, %v2935_v22  ;;  %v1220_v62 = vmul.f32 %v1204_v20, %v2935_v22  ;;  %v787_v4 = vadd.f32 1.0, %v2898_v52  ;;  %v1813_v18 = vadd.f32 -2.4007583, %v1059_v6 }
 0x116   :  { %1933 = vmatprep.subr.bf16.mxu0 %v3279_v37  ;;  %v1235_v24 = vadd.f32 2.4451342, %v1219_v44  ;;  %v1703_v48 = vshrl.u32 %v341_v7, 8  ;;  %v788_v34 = vadd.f32 1.0, %v772_v25  ;;  %v1704_v53 = vshrl.u32 %v342_v42, 8 }
 0x117   :  { %v1814_v51 = vadd.f32 -2.4007583, %v1060_v14  ;;  %v1236_v26 = vadd.f32 2.4451342, %v1220_v62  ;;  %v1091_v41 = vmul.f32 %v1813_v18, %v2926_v8  ;;  %v216_v49 = vxor.u32 %v1658_v61, %v168_v0 }
 0x118   :  { %v1251_v1 = vmul.f32 %v1235_v24, %v2926_v8  ;;  %v389_v60 = vcvt.s32.f32 %v1703_v48  ;;  %v390_v21 = vcvt.s32.f32 %v1704_v53  ;;  %v231_v9 = vmul.u32 2246822507, %v215_v58  ;;  %v1912_v24 = vld [vmem:[#allocation8 + $0x20] sm:$0xff]  }
 0x119   :  { %v1092_v17 = vmul.f32 %v1814_v51, %v2935_v22  ;;  %v1252_v40 = vmul.f32 %v1236_v26, %v2935_v22  ;;  %v595_v52 = vmul.f32 %v2892_v19, %v2793_v32  ;;  %v1829_v27 = vadd.f32 -2.5497324, %v1091_v41 }
 0x11a   :  { %v1267_v43 = vadd.f32 3.7544086, %v1251_v1  ;;  %v405_v28 = vadd.f32 0.5, %v389_v60  ;;  %2041 = vrcp.f32 %v787_v4  ;;  %v406_v31 = vadd.f32 0.5, %v390_v21 }
 0x11b   :  { %v1830_v13 = vadd.f32 -2.5497324, %v1092_v17  ;;  %v1268_v15 = vadd.f32 3.7544086, %v1252_v40  ;;  %v1123_v33 = vmul.f32 %v1829_v27, %v2926_v8  ;;  %v232_v35 = vmul.u32 2246822507, %v216_v49 }
 0x11c   :  { %v1283_v0 = vmul.f32 %v1267_v43, %v2926_v8  ;;  %v421_v46 = vmul.f32 5.9604645e-08, %v405_v28  ;;  %2043 = vrcp.f32 %v788_v34  ;;  %v422_v5 = vmul.f32 5.9604645e-08, %v406_v31 }
 0x11d   :  { %v1124_v29 = vmul.f32 %v1830_v13, %v2935_v22  ;;  %v1284_v45 = vmul.f32 %v1268_v15, %v2935_v22  ;;  %v1139_v32 = vadd.f32 4.3746643, %v1123_v33  ;;  %v1673_v59 = vshrl.u32 %v231_v9, 13 }
 0x11e   :  { %v1299_v19 = vadd.f32 1.0, %v1283_v0  ;;  %v2960_v39 = vadd.f32 -0.5, %v421_v46  ;;  %v837_v54 = vsub.f32 1.0, %v421_v46  ;;  %v2962_v23 = vadd.f32 -0.5, %v422_v5 }
 0x11f   :  { %v1300_v25 = vadd.f32 1.0, %v1284_v45  ;;  %v838_v57 = vsub.f32 1.0, %v422_v5  ;;  %v1140_v30 = vadd.f32 4.3746643, %v1124_v29  ;;  %v1674_v20 = vshrl.u32 %v232_v35, 13 }
 0x120   :  { %2045 = vrcp.f32 %v1299_v19  ;;  %v2964_v16 = vmin.f32 %v421_v46, %v837_v54  ;;  %v596_v36 = vmul.f32 %v2895_v38, %v2805_v12  ;;  %v2970_v6 = vmul.f32 %v2960_v39, %v2960_v39 }
 0x121   :  { %2047 = vrcp.f32 %v1300_v25  ;;  %v2972_v44 = vmin.f32 %v422_v5, %v838_v57  ;;  %v1155_v7 = vmul.f32 %v1139_v32, %v2926_v8  ;;  %v2978_v61 = vmul.f32 %v2962_v23, %v2962_v23 }
 0x122   :  { %2049 = vlog2.f32 %v2964_v16  ;;  %v469_v14 = vmul.f32 -39.69683, %v2970_v6  ;;  %v279_v12 = vxor.u32 %v1673_v59, %v231_v9  ;;  %v611_v38 = vadd.f32 2.5066283, %v595_v52 }
 0x123   :  { %2051 = vlog2.f32 %v2972_v44  ;;  %v1156_v62 = vmul.f32 %v1140_v30, %v2935_v22  ;;  %v280_v42 = vxor.u32 %v1674_v20, %v232_v35  ;;  %v612_v4 = vadd.f32 2.5066283, %v596_v36 }
 0x124   :  { %2053 = vpow2.f32 %v2881_v56  ;;  %v2042_v58 = vpop.eup %2041  ;;  %v645_v8 = vmul.f32 -54.476097, %v2970_v6  ;;  %v1171_v18 = vadd.f32 2.938164, %v1155_v7  ;;  %v470_v48 = vmul.f32 -39.69683, %v2978_v61 }
 0x125   :  { %2055 = vpow2.f32 %v2887_v50  ;;  %v485_v51 = vadd.f32 220.9461, %v469_v14  ;;  %v646_v26 = vmul.f32 -54.476097, %v2978_v61  ;;  %v295_v53 = vmul.u32 3266489909, %v279_v12 }
 0x126   :  { %v2044_v34 = vpop.eup %2043  ;;  %v627_v22 = vmul.f32 %v2781_v10, %v611_v38  ;;  %v1172_v41 = vadd.f32 2.938164, %v1156_v62  ;;  %v296_v56 = vmul.u32 3266489909, %v280_v42  ;;  %v628_v1 = vmul.f32 %v2789_v55, %v612_v4  ;;  %v1906_v42 = vld [vmem:[#allocation10 + $0x28] sm:$0xff]  }
 0x127   :  { %v661_v60 = vadd.f32 161.58583, %v645_v8  ;;  %vm1315_vm4 = vcmp.lt.f32.partialorder %v2781_v10, 0.0  ;;  %v1888_v50 = vunpack.c.l.bf16 %v1912_v24  ;;  %v1889_v17 = vunpack.c.h.bf16 %v1912_v24 }
 0x128   :  { %v486_v40 = vadd.f32 220.9461, %v470_v48  ;;  %v501_v52 = vmul.f32 %v485_v51, %v2970_v6  ;;  %v662_v27 = vadd.f32 161.58583, %v646_v26  ;;  %v1689_v43 = vshrl.u32 %v295_v53, 16 }
 0x129   :  { %v812_v13 = vmul.f32 %v2042_v58, %v627_v22  ;;  %vm1316_vm5 = vcmp.lt.f32.partialorder %v2789_v55, 0.0  ;;  %v1690_v31 = vshrl.u32 %v296_v56, 16  ;;  %v814_v0 = vmul.f32 %v2044_v34, %v628_v1 }
 0x12a   :  { %v2046_v49 = vpop.eup %2045  ;;  %vm1395_vm6 = vcmp.lt.f32.partialorder %v2822_v47, 0.02425  ;;  %v677_v35 = vmul.f32 %v661_v60, %v2970_v6  ;;  %vm1396_vm7 = vcmp.lt.f32.partialorder %v2829_v63, 0.02425  ;;  %v502_v5 = vmul.f32 %v486_v40, %v2978_v61 }
 0x12b   :  { %v2048_v21 = vpop.eup %2047  ;;  %v1340_v9 = vmul.f32 %v2046_v49, %v1171_v18  ;;  %v1735_v25 = vadd.f32 -275.9285, %v501_v52  ;;  %v678_v57 = vmul.f32 %v662_v27, %v2978_v61  ;;  %v343_v59 = vxor.u32 %v1689_v43, %v295_v53 }
 0x12c   :  { %v2050_v28 = vpop.eup %2049  ;;  %v1342_v15 = vmul.f32 %v2048_v21, %v1172_v41  ;;  %v344_v36 = vxor.u32 %v1690_v31, %v296_v56  ;;  %v1767_v63 = vadd.f32 -155.69897, %v677_v35  ;;  %v1736_v38 = vadd.f32 -275.9285, %v502_v5 }
 0x12d   :  { %v2052_v33 = vpop.eup %2051  ;;  %v1363_v46 = vsub.f32 0.0, %v1340_v9  ;;  %v880_v32 = vmul.f32 0.6931472, %v2050_v28  ;;  %v533_v10 = vmul.f32 %v1735_v25, %v2970_v6  ;;  %v1768_v4 = vadd.f32 -155.69897, %v678_v57 }
 0x12e   :  { %v2054_v29 = vpop.eup %2053  ;;  %v1364_v45 = vsub.f32 0.0, %v1342_v15  ;;  %v882_v20 = vmul.f32 0.6931472, %v2052_v33  ;;  %v1705_v8 = vshrl.u32 %v343_v59, 8  ;;  %v1706_v55 = vshrl.u32 %v344_v36, 8 }
 0x12f   :  { %v2056_v19 = vpop.eup %2055  ;;  %v1379_v54 = vsel %vm1315_vm4, %v1340_v9, %v1363_v46  ;;  %v901_v62 = vmul.f32 -2.0, %v880_v32  ;;  %v709_v48 = vmul.f32 %v1767_v63, %v2970_v6  ;;  %v1860_v34 = vunpack.c.l.bf16 %v1906_v42 }
 0x130   :  { %v1380_v47 = vsel %vm1316_vm5, %v1342_v15, %v1364_v45  ;;  %v1411_v30 = vsel %vm1395_vm6, %v1379_v54, %v812_v13  ;;  %v3003_v24 = vmul.f32 -2.0, %v882_v20  ;;  %v1861_v51 = vunpack.c.h.bf16 %v1906_v42 }
 0x131   :  { %v1412_v7 = vsel %vm1396_vm7, %v1380_v47, %v814_v0  ;;  %v1539_v14 = vmul.f32 %v2054_v29, %v1411_v30  ;;  %2057 = vrsqrt.f32 %v901_v62  ;;  %v534_v53 = vmul.f32 %v1736_v38, %v2978_v61  ;;  %v3034_v47 = vld [vmem:[#allocation8 + $0x28] sm:$0xff]  }
 0x132   :  { %v1540_v12 = vmul.f32 %v2056_v19, %v1412_v7  ;;  %v710_v22 = vmul.f32 %v1768_v4, %v2978_v61  ;;  %v549_v41 = vadd.f32 138.35776, %v533_v10  ;;  %2059 = vrsqrt.f32 %v3003_v24 }
 0x133   :  { %v1555_v58 = vadd.f32 %v1888_v50, %v1539_v14  ;;  %v391_v56 = vcvt.s32.f32 %v1705_v8  ;;  %v392_v1 = vcvt.s32.f32 %v1706_v55  ;;  %v725_v60 = vadd.f32 66.801315, %v709_v48 }
 0x134   :  { %v1556_v18 = vadd.f32 %v1889_v17, %v1540_v12  ;;  %v1461_v49 = vmul.f32 0.5, %v1860_v34  ;;  %v1462_v50 = vmul.f32 0.5, %v1861_v51  ;;  %v550_v21 = vadd.f32 138.35776, %v534_v53 }
 0x135   :  { %v407_v17 = vadd.f32 0.5, %v391_v56  ;;  %v408_v40 = vadd.f32 0.5, %v392_v1  ;;  %v3011_v9 = vadd.s32 112, %v2288_v2  ;;  %v565_v52 = vmul.f32 %v549_v41, %v2970_v6 }
 0x136   :  { %v1567_v26 = vpack.c.bf16 %v1556_v18, %v1555_v58  ;;  %v726_v27 = vadd.f32 66.801315, %v710_v22  ;;  %v741_v13 = vmul.f32 %v725_v60, %v2970_v6  ;;  %v3015_v15 = vmul.f32 1.442695, %v1461_v49 }
 0x137   :  { %v423_v43 = vmul.f32 5.9604645e-08, %v407_v17  ;;  %v424_v28 = vmul.f32 5.9604645e-08, %v408_v40  ;;  %v3017_v31 = vmul.f32 1.442695, %v1462_v50  ;;  %vm979_vm8 = vcmp.eq.f32.partialorder %v901_v62, inf }
 0x138   :  { %1934 = vmatpush3.bf16.msra.mxu0 %v1567_v26  ;;  %v982_v0 = vand.u32 2147483648, %v901_v62  ;;  %vm981_vm9 = vcmp.eq.f32.partialorder %v901_v62, 0.0  ;;  %v81_v45 = vadd.s32 120, %v2288_v2  ;;  %v119_v5 = vmul.u32 128, %v3011_v9 }
 0x139   :  { %1935 = vmatprep.subr.bf16.mxu0 %v3279_v37  ;;  %v3019_v46 = vadd.f32 -0.5, %v423_v43  ;;  %v3021_v35 = vadd.f32 -0.5, %v424_v28  ;;  %v566_v32 = vmul.f32 %v550_v21, %v2978_v61  ;;  %v3026_v19 = vadd.f32 -30.664799, %v565_v52 }
 0x13a   :  { %v742_v54 = vmul.f32 %v726_v27, %v2978_v61  ;;  %v1783_v57 = vadd.f32 -13.280682, %v741_v13  ;;  %vm986_vm10 = vcmp.eq.f32.partialorder %v3003_v24, inf  ;;  %v839_v30 = vsub.f32 1.0, %v423_v43 }
 0x13b   :  { %v2058_v33 = vpop.eup %2057  ;;  %v3031_v25 = vmul.f32 %v3019_v46, %v3019_v46  ;;  %v989_v36 = vand.u32 2147483648, %v3003_v24  ;;  %v3041_v7 = vmul.f32 %v3021_v35, %v3021_v35  ;;  %v840_v14 = vsub.f32 1.0, %v424_v28 }
 0x13c   :  { %v978_v29 = vmul.f32 %v2058_v33, %v901_v62  ;;  %v2060_v2 = vpop.eup %2059  ;;  %vm988_vm11 = vcmp.eq.f32.partialorder %v3003_v24, 0.0  ;;  %v1892_v42 = vunpack.c.l.bf16 %v3034_v47  ;;  %v3055_v55 = vmin.f32 %v423_v43, %v839_v30 }
 0x13d   :  { %v985_v63 = vmul.f32 %v2060_v2, %v3003_v24  ;;  %v471_v58 = vmul.f32 -39.69683, %v3031_v25  ;;  %v647_v10 = vmul.f32 -54.476097, %v3031_v25  ;;  %v1784_v48 = vadd.f32 -13.280682, %v742_v54 }
 0x13e   :  { %v980_v59 = vsel %vm979_vm8, %v901_v62, %v978_v29  ;;  %v3047_v62 = vadd.f32 -30.664799, %v566_v32  ;;  %v648_v51 = vmul.f32 -54.476097, %v3041_v7  ;;  %v3060_v26 = vmin.f32 %v424_v28, %v840_v14 }
 0x13f   :  { %v3036_v20 = vsel %vm981_vm9, %v982_v0, %v980_v59  ;;  %v987_v4 = vsel %vm986_vm10, %v3003_v24, %v985_v63  ;;  %v773_v24 = vmul.f32 %v1783_v57, %v2970_v6  ;;  %v487_v1 = vadd.f32 220.9461, %v471_v58 }
 0x140   :  { %v1029_v12 = vmul.f32 -0.007784894, %v3036_v20  ;;  %v1189_v38 = vmul.f32 0.007784696, %v3036_v20  ;;  %v3057_v34 = vsel %vm988_vm11, %v989_v36, %v987_v4  ;;  %v663_v60 = vadd.f32 161.58583, %v647_v10 }
 0x141   :  { %v1030_v53 = vmul.f32 -0.007784894, %v3057_v34  ;;  %v1190_v41 = vmul.f32 0.007784696, %v3057_v34  ;;  %v120_v49 = vmul.u32 128, %v81_v45  ;;  %2061 = vlog2.f32 %v3055_v55 }
 0x142   :  { %v1799_v8 = vadd.f32 -0.32239646, %v1029_v12  ;;  %v1205_v18 = vadd.f32 0.32246712, %v1189_v38  ;;  %v774_v21 = vmul.f32 %v1784_v48, %v2978_v61  ;;  %v664_v52 = vadd.f32 161.58583, %v648_v51 }
 0x143   :  { %v1800_v50 = vadd.f32 -0.32239646, %v1030_v53  ;;  %v1206_v40 = vadd.f32 0.32246712, %v1190_v41  ;;  %2063 = vlog2.f32 %v3060_v26  ;;  %v135_v13 = vadd.s32 %v119_v5, %v2290_v3 }
 0x144   :  { %v1061_v22 = vmul.f32 %v1799_v8, %v3036_v20  ;;  %v1221_v56 = vmul.f32 %v1205_v18, %v3036_v20  ;;  %v472_v0 = vmul.f32 -39.69683, %v3041_v7  ;;  %v503_v29 = vmul.f32 %v487_v1, %v3031_v25 }
 0x145   :  { %v1062_v27 = vmul.f32 %v1800_v50, %v3057_v34  ;;  %v1222_v28 = vmul.f32 %v1206_v40, %v3057_v34  ;;  %v136_v45 = vadd.s32 %v120_v49, %v2290_v3  ;;  %v679_v59 = vmul.f32 %v663_v60, %v3031_v25 }
 0x146   :  { %v1815_v17 = vadd.f32 -2.4007583, %v1061_v22  ;;  %v1237_v9 = vadd.f32 2.4451342, %v1221_v56  ;;  %v789_v30 = vadd.f32 1.0, %v773_v24  ;;  %v790_v2 = vadd.f32 1.0, %v774_v21 }
 0x147   :  { %v1816_v32 = vadd.f32 -2.4007583, %v1062_v27  ;;  %v1238_v57 = vadd.f32 2.4451342, %v1222_v28  ;;  %v680_v14 = vmul.f32 %v664_v52, %v3041_v7  ;;  %v151_v38 = vmul.u32 2654435761, %v135_v13 }
 0x148   :  { %v1093_v43 = vmul.f32 %v1815_v17, %v3036_v20  ;;  %v1253_v33 = vmul.f32 %v1237_v9, %v3036_v20  ;;  %v488_v3 = vadd.f32 220.9461, %v472_v0  ;;  %v1737_v10 = vadd.f32 -275.9285, %v503_v29 }
 0x149   :  { %v1094_v5 = vmul.f32 %v1816_v32, %v3057_v34  ;;  %v1254_v12 = vmul.f32 %v1238_v57, %v3057_v34  ;;  %v152_v4 = vmul.u32 2654435761, %v136_v45  ;;  %2065 = vpow2.f32 %v3015_v15 }
 0x14a   :  { %v1831_v54 = vadd.f32 -2.5497324, %v1093_v43  ;;  %v1269_v36 = vadd.f32 3.7544086, %v1253_v33  ;;  %v1769_v48 = vadd.f32 -155.69897, %v679_v59  ;;  %v597_v51 = vmul.f32 %v3026_v19, %v2970_v6 }
 0x14b   :  { %v1832_v8 = vadd.f32 -2.5497324, %v1094_v5  ;;  %v1270_v18 = vadd.f32 3.7544086, %v1254_v12  ;;  %2067 = vrcp.f32 %v789_v30  ;;  %v1770_v22 = vadd.f32 -155.69897, %v680_v14  ;;  %v2062_v41 = vpop.eup %2061 }
 0x14c   :  { %v1125_v63 = vmul.f32 %v1831_v54, %v3036_v20  ;;  %v1285_v58 = vmul.f32 %v1269_v36, %v3036_v20  ;;  %2069 = vrcp.f32 %v790_v2  ;;  %v598_v49 = vmul.f32 %v3047_v62, %v2978_v61  ;;  %v3099_v43 = vld [vmem:[#allocation10 + $0x30] sm:$0xff]  }
 0x14d   :  { %v1126_v56 = vmul.f32 %v1832_v8, %v3057_v34  ;;  %v1286_v1 = vmul.f32 %v1270_v18, %v3057_v34  ;;  %v2064_v60 = vpop.eup %2063  ;;  %v504_v15 = vmul.f32 %v488_v3, %v3041_v7  ;;  %v169_v50 = vadd.s32 %v2300_v11, %v151_v38 }
 0x14e   :  { %v1301_v53 = vadd.f32 1.0, %v1285_v58  ;;  %v1141_v24 = vadd.f32 4.3746643, %v1125_v63  ;;  %v535_v19 = vmul.f32 %v1737_v10, %v3031_v25  ;;  %v711_v17 = vmul.f32 %v1769_v48, %v3031_v25 }
 0x14f   :  { %v1302_v6 = vadd.f32 1.0, %v1286_v1  ;;  %v170_v40 = vadd.s32 %v2300_v11, %v152_v4  ;;  %v1142_v21 = vadd.f32 4.3746643, %v1126_v56  ;;  %v712_v9 = vmul.f32 %v1770_v22, %v3041_v7 }
 0x150   :  { %2071 = vrcp.f32 %v1301_v53  ;;  %v884_v52 = vmul.f32 0.6931472, %v2062_v41  ;;  %v613_v27 = vadd.f32 2.5066283, %v597_v51  ;;  %v1157_v61 = vmul.f32 %v1141_v24, %v3036_v20 }
 0x151   :  { %2073 = vpow2.f32 %v3017_v31  ;;  %v886_v62 = vmul.f32 0.6931472, %v2064_v60  ;;  %v614_v28 = vadd.f32 2.5066283, %v598_v49  ;;  %v1738_v13 = vadd.f32 -275.9285, %v504_v15 }
 0x152   :  { %2075 = vrcp.f32 %v1302_v6  ;;  %v3101_v33 = vmul.f32 -2.0, %v884_v52  ;;  %v1659_v0 = vshrl.u32 %v169_v50, 16  ;;  %v551_v29 = vadd.f32 138.35776, %v535_v19 }
 0x153   :  { %v727_v11 = vadd.f32 66.801315, %v711_v17  ;;  %v3103_v45 = vmul.f32 -2.0, %v886_v62  ;;  %v1660_v31 = vshrl.u32 %v170_v40, 16  ;;  %v1158_v32 = vmul.f32 %v1142_v21, %v3057_v34  ;;  %v2066_v20 = vpop.eup %2065 }
 0x154   :  { %v1893_v54 = vunpack.c.h.bf16 %v3034_v47  ;;  %v728_v57 = vadd.f32 66.801315, %v712_v9  ;;  %2077 = vrsqrt.f32 %v3101_v33  ;;  %v1173_v59 = vadd.f32 2.938164, %v1157_v61 }
 0x155   :  { %vm1317_vm12 = vcmp.lt.f32.partialorder %v2960_v39, 0.0  ;;  %2079 = vrsqrt.f32 %v3103_v45  ;;  %v1864_v30 = vunpack.c.l.bf16 %v3099_v43  ;;  %v2068_v2 = vpop.eup %2067  ;;  %v629_v36 = vmul.f32 %v2960_v39, %v613_v27 }
 0x156   :  { %v536_v14 = vmul.f32 %v1738_v13, %v3041_v7  ;;  %v217_v5 = vxor.u32 %v1659_v0, %v169_v50  ;;  %v218_v34 = vxor.u32 %v1660_v31, %v170_v40  ;;  %v2070_v63 = vpop.eup %2069  ;;  %v630_v12 = vmul.f32 %v2962_v23, %v614_v28 }
 0x157   :  { %v567_v38 = vmul.f32 %v551_v29, %v3031_v25  ;;  %v743_v58 = vmul.f32 %v727_v11, %v3031_v25  ;;  %v1174_v10 = vadd.f32 2.938164, %v1158_v32  ;;  %v744_v4 = vmul.f32 %v728_v57, %v3041_v7 }
 0x158   :  { %v233_v8 = vmul.u32 2246822507, %v217_v5  ;;  %v234_v18 = vmul.u32 2246822507, %v218_v34  ;;  %vm2213_vm13 = vmmov 0   ;;  %vm1318_vm14 = vcmp.lt.f32.partialorder %v2962_v23, 0.0 }
 0x159   :  { %1941 = vmatprep.mubr.msk.bf16.mxu0 %vm2213_vm13, %v3279_v37  ;;  %vm1397_vm15 = vcmp.lt.f32.partialorder %v2964_v16, 0.02425  ;;  %vm1398_vm0 = vcmp.lt.f32.partialorder %v2972_v44, 0.02425  ;;  %v816_v53 = vmul.f32 %v2068_v2, %v629_v36  ;;  %v3121_v22 = vadd.f32 138.35776, %v536_v14 }
 0x15a   :  { %v2072_v3 = vpop.eup %2071  ;;  %v1675_v41 = vshrl.u32 %v233_v8, 13  ;;  %v1676_v56 = vshrl.u32 %v234_v18, 13  ;;  %v818_v1 = vmul.f32 %v2070_v63, %v630_v12  ;;  %v3123_v49 = vadd.f32 -30.664799, %v567_v38 }
 0x15b   :  { %v1344_v48 = vmul.f32 %v2072_v3, %v1173_v59  ;;  %v2074_v51 = vpop.eup %2073  ;;  %v1785_v15 = vadd.f32 -13.280682, %v743_v58  ;;  %v1786_v6 = vadd.f32 -13.280682, %v744_v4  ;;  %vm993_vm1 = vcmp.eq.f32.partialorder %v3101_v33, inf }
 0x15c   :  { %v2076_v24 = vpop.eup %2075  ;;  %v281_v19 = vxor.u32 %v1675_v41, %v233_v8  ;;  %v282_v17 = vxor.u32 %v1676_v56, %v234_v18  ;;  %vm995_vm2 = vcmp.eq.f32.partialorder %v3101_v33, 0.0  ;;  %v996_v21 = vand.u32 2147483648, %v3101_v33 }
 0x15d   :  { %v1365_v60 = vsub.f32 0.0, %v1344_v48  ;;  %v1346_v50 = vmul.f32 %v2076_v24, %v1174_v10  ;;  %vm1000_vm3 = vcmp.eq.f32.partialorder %v3103_v45, inf  ;;  %v1003_v39 = vand.u32 2147483648, %v3103_v45 }
 0x15e   :  { %v2078_v9 = vpop.eup %2077  ;;  %v297_v61 = vmul.u32 3266489909, %v281_v19  ;;  %v298_v0 = vmul.u32 3266489909, %v282_v17  ;;  %vm1002_vm4 = vcmp.eq.f32.partialorder %v3103_v45, 0.0  ;;  %v568_v19 = vmul.f32 %v3121_v22, %v3041_v7 }
 0x15f   :  { %v1381_v40 = vsel %vm1317_vm12, %v1344_v48, %v1365_v60  ;;  %v1366_v52 = vsub.f32 0.0, %v1346_v50  ;;  %v2080_v62 = vpop.eup %2079  ;;  %v992_v13 = vmul.f32 %v2078_v9, %v3101_v33  ;;  %v775_v48 = vmul.f32 %v1785_v15, %v3031_v25 }
 0x160   :  { %v1413_v27 = vsel %vm1397_vm15, %v1381_v40, %v816_v53  ;;  %v999_v11 = vmul.f32 %v2080_v62, %v3103_v45  ;;  %v1691_v31 = vshrl.u32 %v297_v61, 16  ;;  %v776_v53 = vmul.f32 %v1786_v6, %v3041_v7 }
 0x161   :  { %v1541_v28 = vmul.f32 %v2066_v20, %v1413_v27  ;;  %v1382_v29 = vsel %vm1318_vm14, %v1346_v50, %v1366_v52  ;;  %v994_v57 = vsel %vm993_vm1, %v3101_v33, %v992_v13  ;;  %v1692_v20 = vshrl.u32 %v298_v0, 16 }
 0x162   :  { %v1414_v16 = vsel %vm1398_vm0, %v1382_v29, %v818_v1  ;;  %v3148_v23 = vsel %vm995_vm2, %v996_v21, %v994_v57  ;;  %v1001_v2 = vsel %vm1000_vm3, %v3103_v45, %v999_v11  ;;  %v345_v36 = vxor.u32 %v1691_v31, %v297_v61 }
 0x163   :  { %v1557_v32 = vadd.f32 %v1892_v42, %v1541_v28  ;;  %v1542_v59 = vmul.f32 %v2074_v51, %v1414_v16  ;;  %v3153_v44 = vsel %vm1002_vm4, %v1003_v39, %v1001_v2  ;;  %v1031_v14 = vmul.f32 -0.007784894, %v3148_v23 }
 0x164   :  { %v1191_v42 = vmul.f32 0.007784696, %v3148_v23  ;;  %v346_v5 = vxor.u32 %v1692_v20, %v298_v0  ;;  %v1032_v63 = vmul.f32 -0.007784894, %v3153_v44  ;;  %v1192_v33 = vmul.f32 0.007784696, %v3153_v44 }
 0x165   :  { %v1558_v34 = vadd.f32 %v1893_v54, %v1542_v59  ;;  %v1707_v12 = vshrl.u32 %v345_v36, 8  ;;  %v1801_v38 = vadd.f32 -0.32239646, %v1031_v14  ;;  %v1865_v45 = vunpack.c.h.bf16 %v3099_v43 }
 0x166   :  { %v1207_v58 = vadd.f32 0.32246712, %v1191_v42  ;;  %v1708_v3 = vshrl.u32 %v346_v5, 8  ;;  %v1802_v4 = vadd.f32 -0.32239646, %v1032_v63  ;;  %v1463_v15 = vmul.f32 0.5, %v1864_v30 }
 0x167   :  { %v1568_v10 = vpack.c.bf16 %v1558_v34, %v1557_v32  ;;  %v1208_v8 = vadd.f32 0.32246712, %v1192_v33  ;;  %v393_v18 = vcvt.s32.f32 %v1707_v12  ;;  %v1063_v51 = vmul.f32 %v1801_v38, %v3148_v23 }
 0x168   :  { %v1223_v47 = vmul.f32 %v1207_v58, %v3148_v23  ;;  %v394_v54 = vcvt.s32.f32 %v1708_v3  ;;  %v1064_v41 = vmul.f32 %v1802_v4, %v3153_v44  ;;  %v791_v6 = vadd.f32 1.0, %v775_v48 }
 0x169   :  { %1936 = vmatpush3.bf16.msra.mxu0 %v1568_v10  ;;  %v1224_v56 = vmul.f32 %v1208_v8, %v3153_v44  ;;  %v409_v24 = vadd.f32 0.5, %v393_v18  ;;  %v1817_v1 = vadd.f32 -2.4007583, %v1063_v51  ;;  %v792_v61 = vadd.f32 1.0, %v776_v53 }
 0x16a   :  { %1937 = vmatprep.subr.bf16.mxu0 %v3279_v37  ;;  %v1239_v60 = vadd.f32 2.4451342, %v1223_v47  ;;  %v410_v50 = vadd.f32 0.5, %v394_v54  ;;  %v1818_v17 = vadd.f32 -2.4007583, %v1064_v41  ;;  %v1464_v39 = vmul.f32 0.5, %v1865_v45 }
 0x16b   :  { %v1240_v40 = vadd.f32 2.4451342, %v1224_v56  ;;  %v425_v21 = vmul.f32 5.9604645e-08, %v409_v24  ;;  %v1095_v9 = vmul.f32 %v1817_v1, %v3148_v23  ;;  %2081 = vrcp.f32 %v791_v6 }
 0x16c   :  { %v1255_v52 = vmul.f32 %v1239_v60, %v3148_v23  ;;  %v426_v27 = vmul.f32 5.9604645e-08, %v410_v50  ;;  %v1096_v62 = vmul.f32 %v1818_v17, %v3153_v44  ;;  %v1754_v20 = vadd.f32 -30.664799, %v568_v19  ;;  %v1914_v17 = vld [vmem:[#allocation8 + $0x30] sm:$0xff]  }
 0x16d   :  { %v1256_v28 = vmul.f32 %v1240_v40, %v3153_v44  ;;  %v841_v43 = vsub.f32 1.0, %v425_v21  ;;  %v1833_v30 = vadd.f32 -2.5497324, %v1095_v9  ;;  %v3177_v11 = vadd.f32 -0.5, %v425_v21 }
 0x16e   :  { %v1271_v13 = vadd.f32 3.7544086, %v1255_v52  ;;  %v842_v0 = vsub.f32 1.0, %v426_v27  ;;  %v1834_v22 = vadd.f32 -2.5497324, %v1096_v62  ;;  %2083 = vrcp.f32 %v792_v61 }
 0x16f   :  { %v1272_v29 = vadd.f32 3.7544086, %v1256_v28  ;;  %v3179_v31 = vmin.f32 %v425_v21, %v841_v43  ;;  %v1127_v16 = vmul.f32 %v1833_v30, %v3148_v23  ;;  %v3190_v5 = vmul.f32 %v3177_v11, %v3177_v11 }
 0x170   :  { %v1287_v32 = vmul.f32 %v1271_v13, %v3148_v23  ;;  %v3183_v57 = vmin.f32 %v426_v27, %v842_v0  ;;  %v1128_v59 = vmul.f32 %v1834_v22, %v3153_v44  ;;  %v599_v34 = vmul.f32 %v3123_v49, %v3031_v25 }
 0x171   :  { %v1288_v2 = vmul.f32 %v1272_v29, %v3153_v44  ;;  %2085 = vlog2.f32 %v3179_v31  ;;  %v1143_v14 = vadd.f32 4.3746643, %v1127_v16  ;;  %v1491_v33 = vmul.f32 1.442695, %v1463_v15 }
 0x172   :  { %v1303_v36 = vadd.f32 1.0, %v1287_v32  ;;  %2087 = vlog2.f32 %v3183_v57  ;;  %v1144_v63 = vadd.f32 4.3746643, %v1128_v59  ;;  %v600_v12 = vmul.f32 %v1754_v20, %v3041_v7 }
 0x173   :  { %v1304_v42 = vadd.f32 1.0, %v1288_v2  ;;  %v1493_v38 = vmul.f32 1.442695, %v1464_v39  ;;  %v1159_v58 = vmul.f32 %v1143_v14, %v3148_v23  ;;  %v3197_v45 = vadd.f32 -0.5, %v426_v27 }
 0x174   :  { %2089 = vrcp.f32 %v1303_v36  ;;  %v649_v3 = vmul.f32 -54.476097, %v3190_v5  ;;  %v615_v10 = vadd.f32 2.5066283, %v599_v34  ;;  %v1160_v4 = vmul.f32 %v1144_v63, %v3153_v44 }
 0x175   :  { %2091 = vrcp.f32 %v1304_v42  ;;  %v616_v8 = vadd.f32 2.5066283, %v600_v12  ;;  %v2082_v25 = vpop.eup %2081  ;;  %v1175_v18 = vadd.f32 2.938164, %v1159_v58  ;;  %v3203_v7 = vmul.f32 %v3197_v45, %v3197_v45 }
 0x176   :  { %2093 = vpow2.f32 %v1491_v33  ;;  %v665_v48 = vadd.f32 161.58583, %v649_v3  ;;  %v631_v23 = vmul.f32 %v3019_v46, %v615_v10  ;;  %v1176_v47 = vadd.f32 2.938164, %v1160_v4 }
 0x177   :  { %2095 = vpow2.f32 %v1493_v38  ;;  %v632_v53 = vmul.f32 %v3021_v35, %v616_v8  ;;  %vm1319_vm5 = vcmp.lt.f32.partialorder %v3019_v46, 0.0  ;;  %v650_v1 = vmul.f32 -54.476097, %v3203_v7 }
 0x178   :  { %v2084_v49 = vpop.eup %2083  ;;  %v681_v60 = vmul.f32 %v665_v48, %v3190_v5  ;;  %v820_v50 = vmul.f32 %v2082_v25, %v631_v23  ;;  %vm1320_vm6 = vcmp.lt.f32.partialorder %v3021_v35, 0.0  ;;  %vm1399_vm7 = vcmp.lt.f32.partialorder %v3055_v55, 0.02425 }
 0x179   :  { %v822_v40 = vmul.f32 %v2084_v49, %v632_v53  ;;  %vm1400_vm8 = vcmp.lt.f32.partialorder %v3060_v26, 0.02425  ;;  %v473_v27 = vmul.f32 -39.69683, %v3190_v5  ;;  %v1896_v28 = vunpack.c.l.bf16 %v1914_v17 }
 0x17a   :  { %v666_v43 = vadd.f32 161.58583, %v650_v1  ;;  %v1771_v30 = vadd.f32 -155.69897, %v681_v60  ;;  %v1897_v0 = vunpack.c.h.bf16 %v1914_v17  ;;  %v474_v32 = vmul.f32 -39.69683, %v3203_v7 }
 0x17b   :  { %v2086_v51 = vpop.eup %2085  ;;  %v489_v20 = vadd.f32 220.9461, %v473_v27  ;;  %vm1321_vm13 = vcmp.lt.f32.partialorder %v3177_v11, 0.0  ;;  %vm1401_vm14 = vcmp.lt.f32.partialorder %v3179_v31, 0.02425  ;;  %vm1322_vm15 = vcmp.lt.f32.partialorder %v3197_v45, 0.0 }
 0x17c   :  { %v2088_v54 = vpop.eup %2087  ;;  %v888_v41 = vmul.f32 0.6931472, %v2086_v51  ;;  %v682_v46 = vmul.f32 %v666_v43, %v3203_v7  ;;  %v713_v2 = vmul.f32 %v1771_v30, %v3190_v5  ;;  %v490_v14 = vadd.f32 220.9461, %v474_v32 }
 0x17d   :  { %v890_v6 = vmul.f32 0.6931472, %v2088_v54  ;;  %v505_v55 = vmul.f32 %v489_v20, %v3190_v5  ;;  %vm1402_vm0 = vcmp.lt.f32.partialorder %v3183_v57, 0.02425 }
 0x17e   :  { %v2090_v44 = vpop.eup %2089  ;;  %v905_v15 = vmul.f32 -2.0, %v888_v41  ;;  %v1772_v34 = vadd.f32 -155.69897, %v682_v46  ;;  %v729_v63 = vadd.f32 66.801315, %v713_v2  ;;  %v506_v38 = vmul.f32 %v490_v14, %v3203_v7 }
 0x17f   :  { %v2092_v56 = vpop.eup %2091  ;;  %v1348_v24 = vmul.f32 %v2090_v44, %v1175_v18  ;;  %v906_v16 = vmul.f32 -2.0, %v890_v6  ;;  %v1739_v58 = vadd.f32 -275.9285, %v505_v55 }
 0x180   :  { %v1350_v19 = vmul.f32 %v2092_v56, %v1176_v47  ;;  %2097 = vrsqrt.f32 %v905_v15  ;;  %v2094_v9 = vpop.eup %2093  ;;  %vm1007_vm9 = vcmp.eq.f32.partialorder %v905_v15, inf  ;;  %v1010_v33 = vand.u32 2147483648, %v905_v15 }
 0x181   :  { %v1367_v21 = vsub.f32 0.0, %v1348_v24  ;;  %v2096_v61 = vpop.eup %2095  ;;  %2099 = vrsqrt.f32 %v906_v16  ;;  %vm1009_vm10 = vcmp.eq.f32.partialorder %v905_v15, 0.0  ;;  %v714_v10 = vmul.f32 %v1772_v34, %v3203_v7 }
 0x182   :  { %v1368_v52 = vsub.f32 0.0, %v1350_v19  ;;  %v745_v4 = vmul.f32 %v729_v63, %v3190_v5  ;;  %v1740_v18 = vadd.f32 -275.9285, %v506_v38  ;;  %v537_v48 = vmul.f32 %v1739_v58, %v3190_v5 }
 0x183   :  { %v1383_v62 = vsel %vm1319_vm5, %v1348_v24, %v1367_v21  ;;  %v730_v47 = vadd.f32 66.801315, %v714_v10  ;;  %vm1014_vm11 = vcmp.eq.f32.partialorder %v906_v16, inf  ;;  %v1017_v53 = vand.u32 2147483648, %v906_v16  ;;  %v1908_v24 = vld [vmem:[#allocation10 + $0x38] sm:$0xff]  }
 0x184   :  { %v1384_v13 = vsel %vm1320_vm6, %v1350_v19, %v1368_v52  ;;  %v1415_v39 = vsel %vm1399_vm7, %v1383_v62, %v820_v50  ;;  %v1787_v54 = vadd.f32 -13.280682, %v745_v4  ;;  %vm1016_vm12 = vcmp.eq.f32.partialorder %v906_v16, 0.0 }
 0x185   :  { %v1416_v22 = vsel %vm1400_vm8, %v1384_v13, %v822_v40  ;;  %v1543_v29 = vmul.f32 %v2094_v9, %v1415_v39  ;;  %v553_v1 = vadd.f32 138.35776, %v537_v48  ;;  %v538_v19 = vmul.f32 %v1740_v18, %v3203_v7 }
 0x186   :  { %v1544_v26 = vmul.f32 %v2096_v61, %v1416_v22  ;;  %v746_v17 = vmul.f32 %v730_v47, %v3203_v7  ;;  %v777_v40 = vmul.f32 %v1787_v54, %v3190_v5  ;;  %v1868_v61 = vunpack.c.l.bf16 %v1908_v24 }
 0x187   :  { %v1559_v59 = vadd.f32 %v1896_v28, %v1543_v29  ;;  %v569_v62 = vmul.f32 %v553_v1, %v3190_v5  ;;  %v554_v13 = vadd.f32 138.35776, %v538_v19  ;;  %v1869_v55 = vunpack.c.h.bf16 %v1908_v24 }
 0x188   :  { %v1560_v36 = vadd.f32 %v1897_v0, %v1544_v26  ;;  %v1788_v39 = vadd.f32 -13.280682, %v746_v17  ;;  %v793_v22 = vadd.f32 1.0, %v777_v40  ;;  %v1465_v20 = vmul.f32 0.5, %v1868_v61 }
 0x189   :  { %v1466_v10 = vmul.f32 0.5, %v1869_v55 }
 0x18a   :  { %v1569_v35 = vpack.c.bf16 %v1560_v36, %v1559_v59  ;;  %v2098_v42 = vpop.eup %2097  ;;  %v1755_v59 = vadd.f32 -30.664799, %v569_v62  ;;  %v570_v36 = vmul.f32 %v554_v13, %v3203_v7  ;;  %2101 = vrcp.f32 %v793_v22 }
 0x18b   :  { %v1006_v12 = vmul.f32 %v2098_v42, %v905_v15  ;;  %v1495_v58 = vmul.f32 1.442695, %v1465_v20 }
 0x18c   :  { %1938 = vmatpush3.bf16.msra.mxu0 %v1569_v35  ;;  %v778_v35 = vmul.f32 %v1788_v39, %v3203_v7  ;;  %v1756_v4 = vadd.f32 -30.664799, %v570_v36  ;;  %v1571_v39 = vld [vmem:[#allocation5] sm:$0xff] }
 0x18d   :  { %1939 = vmatprep.subr.bf16.mxu0 %v3279_v37  ;;  %v1008_v3 = vsel %vm1007_vm9, %v905_v15, %v1006_v12  ;;  %v2100_v37 = vpop.eup %2099  ;;  %v1573_v22 = vpack.c.bf16 %v1571_v39, %v1571_v39 }
 0x18e   :  { %v3228_v8 = vsel %vm1009_vm10, %v1010_v33, %v1008_v3  ;;  %v1013_v41 = vmul.f32 %v2100_v37, %v906_v16  ;;  %v601_v33 = vmul.f32 %v1755_v59, %v3190_v5  ;;  %v794_v3 = vadd.f32 1.0, %v778_v35 }
 0x18f   :  { %v1033_v25 = vmul.f32 -0.007784894, %v3228_v8  ;;  %v1193_v49 = vmul.f32 0.007784696, %v3228_v8  ;;  %v602_v37 = vmul.f32 %v1756_v4, %v3203_v7  ;;  %v1497_v5 = vmul.f32 1.442695, %v1466_v10 }
 0x190   :  { %v1015_v60 = vsel %vm1014_vm11, %v906_v16, %v1013_v41  ;;  %v617_v48 = vadd.f32 2.5066283, %v601_v33 }
 0x191   :  { %v1803_v51 = vadd.f32 -0.32239646, %v1033_v25  ;;  %v1209_v23 = vadd.f32 0.32246712, %v1193_v49  ;;  %v1018_v21 = vsel %vm1016_vm12, %v1017_v53, %v1015_v60 }
 0x192   :  { %v1034_v6 = vmul.f32 -0.007784894, %v1018_v21  ;;  %v1194_v52 = vmul.f32 0.007784696, %v1018_v21  ;;  %v633_v53 = vmul.f32 %v3177_v11, %v617_v48 }
 0x193   :  { %v1065_v44 = vmul.f32 %v1803_v51, %v3228_v8  ;;  %v1225_v56 = vmul.f32 %v1209_v23, %v3228_v8 }
 0x194   :  { %v1804_v28 = vadd.f32 -0.32239646, %v1034_v6  ;;  %v1210_v30 = vadd.f32 0.32246712, %v1194_v52  ;;  %v2102_v54 = vpop.eup %2101  ;;  %v1915_v6 = vld [vmem:[#allocation8 + $0x38] sm:$0xff]  }
 0x195   :  { %v1819_v15 = vadd.f32 -2.4007583, %v1065_v44  ;;  %v1241_v50 = vadd.f32 2.4451342, %v1225_v56  ;;  %v618_v56 = vadd.f32 2.5066283, %v602_v37  ;;  %v1900_v11 = vunpack.c.l.bf16 %v1915_v6 }
 0x196   :  { %v1066_v29 = vmul.f32 %v1804_v28, %v1018_v21  ;;  %v1226_v26 = vmul.f32 %v1210_v30, %v1018_v21  ;;  %v1901_v31 = vunpack.c.h.bf16 %v1915_v6 }
 0x197   :  { %v1097_v9 = vmul.f32 %v1819_v15, %v3228_v8  ;;  %v1257_v27 = vmul.f32 %v1241_v50, %v3228_v8  ;;  %v634_v7 = vmul.f32 %v3197_v45, %v618_v56  ;;  %v1837_v45 = vld [vmem:[%s3273_s4] ss:$0 sm:$0xff] }
 0x198   :  { %v1820_v46 = vadd.f32 -2.4007583, %v1066_v29  ;;  %v1242_v2 = vadd.f32 2.4451342, %v1226_v26 }
 0x199   :  { %v1835_v43 = vadd.f32 -2.5497324, %v1097_v9  ;;  %v1273_v0 = vadd.f32 3.7544086, %v1257_v27 }
 0x19a   :  { %v1098_v42 = vmul.f32 %v1820_v46, %v1018_v21  ;;  %v1258_v63 = vmul.f32 %v1242_v2, %v1018_v21 }
 0x19b   :  { %v1129_v16 = vmul.f32 %v1835_v43, %v3228_v8  ;;  %v1289_v32 = vmul.f32 %v1273_v0, %v3228_v8 }
 0x19c   :  { %v1836_v12 = vadd.f32 -2.5497324, %v1098_v42  ;;  %v1274_v38 = vadd.f32 3.7544086, %v1258_v63 }
 0x19d   :  { %v1305_v14 = vadd.f32 1.0, %v1289_v32  ;;  %v1145_v34 = vadd.f32 4.3746643, %v1129_v16 }
 0x19e   :  { %v1130_v25 = vmul.f32 %v1836_v12, %v1018_v21  ;;  %v1290_v18 = vmul.f32 %v1274_v38, %v1018_v21 }
 0x19f   :  { %2103 = vrcp.f32 %v1305_v14  ;;  %v1161_v49 = vmul.f32 %v1145_v34, %v3228_v8  ;;  %v824_v8 = vmul.f32 %v2102_v54, %v633_v53 }
 0x1a0   :  { %v1306_v51 = vadd.f32 1.0, %v1290_v18  ;;  %2105 = vpow2.f32 %v1495_v58  ;;  %v1146_v23 = vadd.f32 4.3746643, %v1130_v25 }
 0x1a1   :  { %2107 = vrcp.f32 %v794_v3  ;;  %v1177_v47 = vadd.f32 2.938164, %v1161_v49 }
 0x1a2   :  { %2109 = vrcp.f32 %v1306_v51  ;;  %v1162_v44 = vmul.f32 %v1146_v23, %v1018_v21 }
 0x1a3   :  { %2111 = vpow2.f32 %v1497_v5 }
 0x1a4   :  { %v1178_v60 = vadd.f32 2.938164, %v1162_v44 }
 0x1a9   :  { %v2104_v41 = vpop.eup %2103 }
 0x1aa   :  { %v1352_v24 = vmul.f32 %v2104_v41, %v1177_v47  ;;  %v2106_v15 = vpop.eup %2105 }
 0x1ab   :  { %v2108_v19 = vpop.eup %2107 }
 0x1ac   :  { %v1369_v1 = vsub.f32 0.0, %v1352_v24  ;;  %v2110_v17 = vpop.eup %2109  ;;  %v826_v21 = vmul.f32 %v2108_v19, %v634_v7 }
 0x1ad   :  { %v1354_v9 = vmul.f32 %v2110_v17, %v1178_v60  ;;  %v2112_v61 = vpop.eup %2111 }
 0x1ae   :  { %v1385_v50 = vsel %vm1321_vm13, %v1352_v24, %v1369_v1 }
 0x1af   :  { %v1417_v40 = vsel %vm1401_vm14, %v1385_v50, %v824_v8  ;;  %v1370_v52 = vsub.f32 0.0, %v1354_v9 }
 0x1b0   :  { %v1545_v27 = vmul.f32 %v2106_v15, %v1417_v40 }
 0x1b1   :  { %v1386_v62 = vsel %vm1322_vm15, %v1354_v9, %v1370_v52 }
 0x1b2   :  { %v1418_v28 = vsel %vm1402_vm0, %v1386_v62, %v826_v21  ;;  %v1561_v30 = vadd.f32 %v1900_v11, %v1545_v27 }
 0x1b3   :  { %v1546_v43 = vmul.f32 %v2112_v61, %v1418_v28 }
 0x1b5   :  { %v1562_v13 = vadd.f32 %v1901_v31, %v1546_v43 }
 0x1b7   :  { %v1570_v0 = vpack.c.bf16 %v1562_v13, %v1561_v30 }
 0x1b9   :  { %1940 = vmatpush3.bf16.msra.mxu0 %v1570_v0 }
 0x1bc   :  { %1942 = vmatmul.mubr.bf16.vlgmr.msra.gmra.mrb[0].mxu0 %v1573_v22 }
 0x28f   :  { %v1608_v57 = vpop.f32.mrb[0].mxu0 }
 0x290   :  { %v1627_v29 = vadd.f32 %v1837_v45, %v1608_v57  ;;  %v1943_v16 = vpop.f32.mrb[1].mxu0 }
 0x291   :  { %v1611_v26 = vpop.f32.mrb[2].mxu0 }
 0x292   :  { %1628 = vst [vmem:[#allocation11] sm:$0xff] %v1627_v29  ;;  %v1944_v32 = vpop.f32.mrb[3].mxu0 }
 0x293   :  { %2190 = shalt.err (!%p2187_p0)
}
 0x294   :  { %s2191_s4 = scalar_lea.hbm %s3274_s5, 128 }
 0x295   :  { %p2192_p1 = scmp.ne.s32.totalorder %s3274_s5, %s2191_s4  ;;  %p2195_p2 = scmp.lt.u32.totalorder %s2191_s4, %s3274_s5 }
 0x297   :  { %p2197_p3 = pnand %p2195_p2, %p2192_p1 }
 0x299   :  { %2200 = shalt.err (!%p2197_p3)
}
 0x29a   :  { %1638 = dma.vmem_to_hbm [thread:$0]  %s1636_s7, 128, %s3274_s5, [#allocation7]  }
 0x29b   :  { %2205 = dma.done.wait [#allocation7], 128  }
 0x29c   :  { %2206 = vsyncadd [#allocation7], 4294967168 }
 0x29d   :  { %1642 = vsyncpa [#allocation6], 1 }
 0x29e   :  { %1643 = vsyncpa [#allocation9], 1 }
 0x29f   :  { %1644 = vsyncpa [#allocation7], 1 }

</bundles_post_ra>
